<compile_context>
chip_gen: v7x
topology: tpu7x:2x2x1
jax: 0.10.0
libtpu: 0.0.40
codegen_flags: <defaults>
</compile_context>

<pallas_src>
import functools

import jax
import jax.numpy as jnp
from jax import lax
from jax.experimental import pallas as pl
from jax.experimental.pallas import tpu as pltpu

INPUT_SIZE = 28
HIDDEN_SIZE = 128
NUM_CLASSES = 10
SEQ_LEN = 28
BATCH = 8
LANE = 128  # lane-dense padding for the class dimension


def _rnn_net_kernel(x_ref, wih_ref, whh_ref, b_ref, wout_ref, bout_ref,
                    out_ref, xw_scr, *, seq_len, batch):
    """Whole forward in one invocation.

    x_ref:    (T*B, I)   bf16  time-major flattened input
    wih_ref:  (I, H)     bf16  W_ih^T
    whh_ref:  (H, H)     bf16  W_hh^T
    b_ref:    (1, H)     f32   b_ih + b_hh
    wout_ref: (H, 128)   bf16  W_out^T zero-padded on the class axis
    bout_ref: (1, 128)   f32   b_out zero-padded
    out_ref:  (B, 128)   f32   lane-dense logits (first num_classes lanes valid)
    xw_scr:   (T*B, H)   f32   VMEM scratch: precomputed input projection
    """
    # (1) Prologue: input projection for ALL time steps at once.
    #     One (T*B, I) @ (I, H) bf16 matmul (f32 accumulate) + bias,
    #     entirely off the sequential chain.
    xw_scr[...] = (
        jnp.dot(x_ref[...], wih_ref[...], preferred_element_type=jnp.float32)
        + b_ref[...]
    )

    hidden = whh_ref.shape[0]

    # (2) Recurrence: only the h-dependent matmul + tanh on the serial chain.
    #     whh_ref is indexed inside the dot (not held in a long-lived vreg
    #     variable) to avoid spill/fill across the unrolled 28 steps.
    def step(t, h):
        row = pl.multiple_of(t * batch, batch)
        xw_t = xw_scr[pl.ds(row, batch), :]          # (B, H) contiguous slab
        h_new = jnp.tanh(
            xw_t + jnp.dot(h, whh_ref[...],
                           preferred_element_type=jnp.float32))
        return h_new.astype(jnp.bfloat16)            # bf16 operand for next step

    h0 = jnp.zeros((batch, hidden), jnp.bfloat16)
    h_last = lax.fori_loop(0, seq_len, step, h0, unroll=True)

    # (3) Output projection (lane-dense, padded class dim) -> unmasked vst.
    out_ref[...] = (
        jnp.dot(h_last, wout_ref[...], preferred_element_type=jnp.float32)
        + bout_ref[...]
    ).astype(out_ref.dtype)


def prepare_params(params):
    """One-time parameter prep (hoisted out of the per-call path).

    Transposes, bias folding, class-lane zero-padding and bf16 casts are done
    once here; reuse the returned tuple for every forward call.
    """
    w_ih, w_hh, b_ih, b_hh, w_out, b_out = params
    H = w_ih.shape[0]
    C = w_out.shape[0]
    wih_t = jnp.transpose(w_ih, (1, 0)).astype(jnp.bfloat16)          # (I, H)
    whh_t = jnp.transpose(w_hh, (1, 0)).astype(jnp.bfloat16)          # (H, H)
    b = (b_ih + b_hh).reshape(1, H).astype(jnp.float32)               # (1, H)
    wout_pad = jnp.zeros((H, LANE), jnp.bfloat16).at[:, :C].set(
        jnp.transpose(w_out, (1, 0)).astype(jnp.bfloat16))            # (H, 128)
    bout_pad = jnp.zeros((1, LANE), jnp.float32).at[:, :C].set(
        b_out.astype(jnp.float32))                                    # (1, 128)
    return (wih_t, whh_t, b, wout_pad, bout_pad)


@functools.partial(jax.jit, static_argnames=("num_classes",))
def net_forward(x, prepared, num_classes=NUM_CLASSES):
    """x: (B, T, I) float32 (batch_first, like the PyTorch module)."""
    wih_t, whh_t, b, wout_pad, bout_pad = prepared
    B, T, I = x.shape
    H = whh_t.shape[0]

    # Only per-call data prep: time-major flatten + bf16 cast for the MXU.
    x2d = jnp.transpose(x, (1, 0, 2)).reshape(T * B, I).astype(jnp.bfloat16)

    # Advisory cost estimate for XLA's scheduler around this tiny custom call.
    flops = 2 * T * B * I * H + 2 * T * B * H * H + 2 * B * H * LANE
    transcendentals = T * B * H
    bytes_accessed = (T * B * I * 2 + I * H * 2 + H * H * 2 + H * 4
                      + H * LANE * 2 + LANE * 4 + B * LANE * 4)

    grid_spec = pltpu.PrefetchScalarGridSpec(
        num_scalar_prefetch=0,
        grid=(1,),  # single invocation; time loop lives inside the kernel
        in_specs=[
            pl.BlockSpec((T * B, I), lambda i: (0, 0)),     # x (whole tensor)
            pl.BlockSpec((I, H), lambda i: (0, 0)),         # W_ih^T
            pl.BlockSpec((H, H), lambda i: (0, 0)),         # W_hh^T
            pl.BlockSpec((1, H), lambda i: (0, 0)),         # b_ih + b_hh
            pl.BlockSpec((H, LANE), lambda i: (0, 0)),      # W_out^T (padded)
            pl.BlockSpec((1, LANE), lambda i: (0, 0)),      # b_out (padded)
        ],
        out_specs=pl.BlockSpec((B, LANE), lambda i: (0, 0)),
        scratch_shapes=[pltpu.VMEM((T * B, H), jnp.float32)],
    )

    out_pad = pl.pallas_call(
        functools.partial(_rnn_net_kernel, seq_len=T, batch=B),
        out_shape=jax.ShapeDtypeStruct((B, LANE), jnp.float32),
        grid_spec=grid_spec,
        compiler_params=pltpu.CompilerParams(
            dimension_semantics=("arbitrary",)),
        cost_estimate=pl.CostEstimate(
            flops=flops,
            transcendentals=transcendentals,
            bytes_accessed=bytes_accessed),
    )(x2d, wih_t, whh_t, b, wout_pad, bout_pad)

    return out_pad[:, :num_classes]


def init_params(key, input_size=INPUT_SIZE, hidden_size=HIDDEN_SIZE,
                num_classes=NUM_CLASSES):
    """Deterministic synthetic parameters matching nn.RNN / nn.Linear shapes."""
    k = jax.random.split(key, 6)
    s_rnn = 1.0 / jnp.sqrt(hidden_size)
    s_lin = 1.0 / jnp.sqrt(hidden_size)
    w_ih = jax.random.uniform(k[0], (hidden_size, input_size), jnp.float32, -s_rnn, s_rnn)
    w_hh = jax.random.uniform(k[1], (hidden_size, hidden_size), jnp.float32, -s_rnn, s_rnn)
    b_ih = jax.random.uniform(k[2], (hidden_size,), jnp.float32, -s_rnn, s_rnn)
    b_hh = jax.random.uniform(k[3], (hidden_size,), jnp.float32, -s_rnn, s_rnn)
    w_out = jax.random.uniform(k[4], (num_classes, hidden_size), jnp.float32, -s_lin, s_lin)
    b_out = jax.random.uniform(k[5], (num_classes,), jnp.float32, -s_lin, s_lin)
    return (w_ih, w_hh, b_ih, b_hh, w_out, b_out)


def net_forward_ref_f32(x, params):
    """Pure-f32 JAX reference of the PyTorch forward."""
    w_ih, w_hh, b_ih, b_hh, w_out, b_out = params
    B, T, I = x.shape
    h = jnp.zeros((B, w_ih.shape[0]), jnp.float32)
    for t in range(T):
        h = jnp.tanh(x[:, t, :] @ w_ih.T + b_ih + h @ w_hh.T + b_hh)
    return h @ w_out.T + b_out


def net_forward_ref_bf16(x, params):
    """Same recurrence, but matmul operands cast to bf16 with f32 accumulate —
    mirrors the kernel's MXU dtype choice for a tight numerical check."""
    w_ih, w_hh, b_ih, b_hh, w_out, b_out = params
    B, T, I = x.shape
    bf = jnp.bfloat16
    wih_t = w_ih.T.astype(bf)
    whh_t = w_hh.T.astype(bf)
    wout_t = w_out.T.astype(bf)
    h = jnp.zeros((B, w_ih.shape[0]), jnp.float32)
    for t in range(T):
        xw = jnp.dot(x[:, t, :].astype(bf), wih_t,
                     preferred_element_type=jnp.float32)
        hw = jnp.dot(h.astype(bf), whh_t, preferred_element_type=jnp.float32)
        h = jnp.tanh(xw + (b_ih + b_hh) + hw)
    return jnp.dot(h.astype(bf), wout_t,
                   preferred_element_type=jnp.float32) + b_out


if __name__ == "__main__":
    key = jax.random.PRNGKey(0)
    kx, kp = jax.random.split(key)

    # MNIST-as-sequence input: (batch, seq_len=28 rows, input_size=28 pixels/row)
    x = jax.random.normal(kx, (BATCH, SEQ_LEN, INPUT_SIZE), jnp.float32)
    params = init_params(kp)

    prepared = prepare_params(params)           # one-time parameter prep
    out = net_forward(x, prepared)
    out = jax.block_until_ready(out)

    assert out.shape == (BATCH, NUM_CLASSES)

    # Tight check vs a reference with the same bf16-operand / f32-accumulate
    # matmul math (validates recurrence, bias folding, padding, slicing).
    ref_bf16 = net_forward_ref_bf16(x, params)
    assert jnp.allclose(out, ref_bf16, atol=1e-2, rtol=1e-2), (
        "mismatch vs bf16-matmul JAX reference")

    # Looser sanity check vs the pure-f32 PyTorch-equivalent reference
    # (bf16 MXU operands introduce ~1e-3..1e-2 deviations over 28 steps).
    ref_f32 = net_forward_ref_f32(x, params)
    assert jnp.allclose(out, ref_f32, atol=1e-1, rtol=1e-1), (
        "mismatch vs f32 JAX reference")

    print("KERNEL_OK")
</pallas_src>

<mosaic_0001>
module attributes {stable_mosaic.version = 11 : i64} {
  func.func @_rnn_net_kernel(%arg0: i32, %arg1: memref<224x28xbf16, #tpu.memory_space<vmem>>, %arg2: memref<28x128xbf16, #tpu.memory_space<vmem>>, %arg3: memref<128x128xbf16, #tpu.memory_space<vmem>>, %arg4: memref<1x128xf32, #tpu.memory_space<vmem>>, %arg5: memref<128x128xbf16, #tpu.memory_space<vmem>>, %arg6: memref<1x128xf32, #tpu.memory_space<vmem>>, %arg7: memref<8x128xf32, #tpu.memory_space<vmem>>, %arg8: memref<224x128xf32, #tpu.memory_space<vmem>>) attributes {dimension_semantics = [#tpu.dimension_semantics<arbitrary>], iteration_bounds = array<i64: 1>, scalar_prefetch = 0 : i64, scratch_operands = 1 : i64, tpu.core_type = #tpu.core_type<tc>, window_params = [{pipeline_mode = #tpu.pipeline_mode<synchronous>, transform_indices = @transform_0, window_bounds = array<i64: 224, 28>}, {pipeline_mode = #tpu.pipeline_mode<synchronous>, transform_indices = @transform_1, window_bounds = array<i64: 28, 128>}, {pipeline_mode = #tpu.pipeline_mode<synchronous>, transform_indices = @transform_2, window_bounds = array<i64: 128, 128>}, {pipeline_mode = #tpu.pipeline_mode<synchronous>, transform_indices = @transform_3, window_bounds = array<i64: 1, 128>}, {pipeline_mode = #tpu.pipeline_mode<synchronous>, transform_indices = @transform_4, window_bounds = array<i64: 128, 128>}, {pipeline_mode = #tpu.pipeline_mode<synchronous>, transform_indices = @transform_5, window_bounds = array<i64: 1, 128>}, {pipeline_mode = #tpu.pipeline_mode<synchronous>, transform_indices = @transform_6, window_bounds = array<i64: 8, 128>}]} {
    %c0 = arith.constant 0 : index
    %c0_0 = arith.constant 0 : index
    %0 = vector.load %arg1[%c0, %c0_0] : memref<224x28xbf16, #tpu.memory_space<vmem>>, vector<224x28xbf16>
    %c0_1 = arith.constant 0 : index
    %c0_2 = arith.constant 0 : index
    %1 = vector.load %arg2[%c0_1, %c0_2] : memref<28x128xbf16, #tpu.memory_space<vmem>>, vector<28x128xbf16>
    %cst = arith.constant dense<0.000000e+00> : vector<224x128xf32>
    %2 = tpu.matmul %0, %1, %cst {dimension_numbers = #tpu.dot_dimension_numbers<[1], [0], [0], [1], [0, 0, 1, 1], [], []>} : vector<224x28xbf16>, vector<28x128xbf16>, vector<224x128xf32> -> vector<224x128xf32>
    %c0_3 = arith.constant 0 : index
    %c0_4 = arith.constant 0 : index
    %3 = vector.load %arg4[%c0_3, %c0_4] : memref<1x128xf32, #tpu.memory_space<vmem>>, vector<1x128xf32>
    %4 = vector.broadcast %3 : vector<1x128xf32> to vector<224x128xf32>
    %5 = arith.addf %2, %4 : vector<224x128xf32>
    %c0_5 = arith.constant 0 : index
    %c0_6 = arith.constant 0 : index
    %6 = vector.load %arg8[%c0_5, %c0_6] : memref<224x128xf32, #tpu.memory_space<vmem>>, vector<224x128xf32>
    tpu.vector_store %arg8[%c0_5, %c0_6], %5 {strides = array<i32>} : memref<224x128xf32, #tpu.memory_space<vmem>>, vector<224x128xf32>,
    %cst_7 = arith.constant 0.000000e+00 : bf16
    %7 = vector.broadcast %cst_7 : bf16 to vector<8x128xbf16>
    %c0_i32 = arith.constant 0 : i32
    %c8_i32 = arith.constant 8 : i32
    %8 = arith.muli %c0_i32, %c8_i32 : i32
    %9 = tpu.assume_multiple %8, 8 : i32
    %10 = arith.index_cast %9 : i32 to index
    %c0_8 = arith.constant 0 : index
    %11 = vector.load %arg8[%10, %c0_8] : memref<224x128xf32, #tpu.memory_space<vmem>>, vector<8x128xf32>
    %c0_9 = arith.constant 0 : index
    %c0_10 = arith.constant 0 : index
    %12 = vector.load %arg3[%c0_9, %c0_10] : memref<128x128xbf16, #tpu.memory_space<vmem>>, vector<128x128xbf16>
    %cst_11 = arith.constant dense<0.000000e+00> : vector<8x128xf32>
    %13 = tpu.matmul %7, %12, %cst_11 {dimension_numbers = #tpu.dot_dimension_numbers<[1], [0], [0], [1], [0, 0, 1, 1], [], []>} : vector<8x128xbf16>, vector<128x128xbf16>, vector<8x128xf32> -> vector<8x128xf32>
    %14 = arith.addf %11, %13 : vector<8x128xf32>
    %15 = math.tanh %14 : vector<8x128xf32>
    %16 = arith.truncf %15 : vector<8x128xf32> to vector<8x128xbf16>
    %c1_i32 = arith.constant 1 : i32
    %c8_i32_12 = arith.constant 8 : i32
    %17 = arith.muli %c1_i32, %c8_i32_12 : i32
    %18 = tpu.assume_multiple %17, 8 : i32
    %19 = arith.index_cast %18 : i32 to index
    %c0_13 = arith.constant 0 : index
    %20 = vector.load %arg8[%19, %c0_13] : memref<224x128xf32, #tpu.memory_space<vmem>>, vector<8x128xf32>
    %c0_14 = arith.constant 0 : index
    %c0_15 = arith.constant 0 : index
    %21 = vector.load %arg3[%c0_14, %c0_15] : memref<128x128xbf16, #tpu.memory_space<vmem>>, vector<128x128xbf16>
    %cst_16 = arith.constant dense<0.000000e+00> : vector<8x128xf32>
    %22 = tpu.matmul %16, %21, %cst_16 {dimension_numbers = #tpu.dot_dimension_numbers<[1], [0], [0], [1], [0, 0, 1, 1], [], []>} : vector<8x128xbf16>, vector<128x128xbf16>, vector<8x128xf32> -> vector<8x128xf32>
    %23 = arith.addf %20, %22 : vector<8x128xf32>
    %24 = math.tanh %23 : vector<8x128xf32>
    %25 = arith.truncf %24 : vector<8x128xf32> to vector<8x128xbf16>
    %c2_i32 = arith.constant 2 : i32
    %c8_i32_17 = arith.constant 8 : i32
    %26 = arith.muli %c2_i32, %c8_i32_17 : i32
    %27 = tpu.assume_multiple %26, 8 : i32
    %28 = arith.index_cast %27 : i32 to index
    %c0_18 = arith.constant 0 : index
    %29 = vector.load %arg8[%28, %c0_18] : memref<224x128xf32, #tpu.memory_space<vmem>>, vector<8x128xf32>
    %c0_19 = arith.constant 0 : index
    %c0_20 = arith.constant 0 : index
    %30 = vector.load %arg3[%c0_19, %c0_20] : memref<128x128xbf16, #tpu.memory_space<vmem>>, vector<128x128xbf16>
    %cst_21 = arith.constant dense<0.000000e+00> : vector<8x128xf32>
    %31 = tpu.matmul %25, %30, %cst_21 {dimension_numbers = #tpu.dot_dimension_numbers<[1], [0], [0], [1], [0, 0, 1, 1], [], []>} : vector<8x128xbf16>, vector<128x128xbf16>, vector<8x128xf32> -> vector<8x128xf32>
    %32 = arith.addf %29, %31 : vector<8x128xf32>
    %33 = math.tanh %32 : vector<8x128xf32>
    %34 = arith.truncf %33 : vector<8x128xf32> to vector<8x128xbf16>
    %c3_i32 = arith.constant 3 : i32
    %c8_i32_22 = arith.constant 8 : i32
    %35 = arith.muli %c3_i32, %c8_i32_22 : i32
    %36 = tpu.assume_multiple %35, 8 : i32
    %37 = arith.index_cast %36 : i32 to index
    %c0_23 = arith.constant 0 : index
    %38 = vector.load %arg8[%37, %c0_23] : memref<224x128xf32, #tpu.memory_space<vmem>>, vector<8x128xf32>
    %c0_24 = arith.constant 0 : index
    %c0_25 = arith.constant 0 : index
    %39 = vector.load %arg3[%c0_24, %c0_25] : memref<128x128xbf16, #tpu.memory_space<vmem>>, vector<128x128xbf16>
    %cst_26 = arith.constant dense<0.000000e+00> : vector<8x128xf32>
    %40 = tpu.matmul %34, %39, %cst_26 {dimension_numbers = #tpu.dot_dimension_numbers<[1], [0], [0], [1], [0, 0, 1, 1], [], []>} : vector<8x128xbf16>, vector<128x128xbf16>, vector<8x128xf32> -> vector<8x128xf32>
    %41 = arith.addf %38, %40 : vector<8x128xf32>
    %42 = math.tanh %41 : vector<8x128xf32>
    %43 = arith.truncf %42 : vector<8x128xf32> to vector<8x128xbf16>
    %c4_i32 = arith.constant 4 : i32
    %c8_i32_27 = arith.constant 8 : i32
    %44 = arith.muli %c4_i32, %c8_i32_27 : i32
    %45 = tpu.assume_multiple %44, 8 : i32
    %46 = arith.index_cast %45 : i32 to index
    %c0_28 = arith.constant 0 : index
    %47 = vector.load %arg8[%46, %c0_28] : memref<224x128xf32, #tpu.memory_space<vmem>>, vector<8x128xf32>
    %c0_29 = arith.constant 0 : index
    %c0_30 = arith.constant 0 : index
    %48 = vector.load %arg3[%c0_29, %c0_30] : memref<128x128xbf16, #tpu.memory_space<vmem>>, vector<128x128xbf16>
    %cst_31 = arith.constant dense<0.000000e+00> : vector<8x128xf32>
    %49 = tpu.matmul %43, %48, %cst_31 {dimension_numbers = #tpu.dot_dimension_numbers<[1], [0], [0], [1], [0, 0, 1, 1], [], []>} : vector<8x128xbf16>, vector<128x128xbf16>, vector<8x128xf32> -> vector<8x128xf32>
    %50 = arith.addf %47, %49 : vector<8x128xf32>
    %51 = math.tanh %50 : vector<8x128xf32>
    %52 = arith.truncf %51 : vector<8x128xf32> to vector<8x128xbf16>
    %c5_i32 = arith.constant 5 : i32
    %c8_i32_32 = arith.constant 8 : i32
    %53 = arith.muli %c5_i32, %c8_i32_32 : i32
    %54 = tpu.assume_multiple %53, 8 : i32
    %55 = arith.index_cast %54 : i32 to index
    %c0_33 = arith.constant 0 : index
    %56 = vector.load %arg8[%55, %c0_33] : memref<224x128xf32, #tpu.memory_space<vmem>>, vector<8x128xf32>
    %c0_34 = arith.constant 0 : index
    %c0_35 = arith.constant 0 : index
    %57 = vector.load %arg3[%c0_34, %c0_35] : memref<128x128xbf16, #tpu.memory_space<vmem>>, vector<128x128xbf16>
    %cst_36 = arith.constant dense<0.000000e+00> : vector<8x128xf32>
    %58 = tpu.matmul %52, %57, %cst_36 {dimension_numbers = #tpu.dot_dimension_numbers<[1], [0], [0], [1], [0, 0, 1, 1], [], []>} : vector<8x128xbf16>, vector<128x128xbf16>, vector<8x128xf32> -> vector<8x128xf32>
    %59 = arith.addf %56, %58 : vector<8x128xf32>
    %60 = math.tanh %59 : vector<8x128xf32>
    %61 = arith.truncf %60 : vector<8x128xf32> to vector<8x128xbf16>
    %c6_i32 = arith.constant 6 : i32
    %c8_i32_37 = arith.constant 8 : i32
    %62 = arith.muli %c6_i32, %c8_i32_37 : i32
    %63 = tpu.assume_multiple %62, 8 : i32
    %64 = arith.index_cast %63 : i32 to index
    %c0_38 = arith.constant 0 : index
    %65 = vector.load %arg8[%64, %c0_38] : memref<224x128xf32, #tpu.memory_space<vmem>>, vector<8x128xf32>
    %c0_39 = arith.constant 0 : index
    %c0_40 = arith.constant 0 : index
    %66 = vector.load %arg3[%c0_39, %c0_40] : memref<128x128xbf16, #tpu.memory_space<vmem>>, vector<128x128xbf16>
    %cst_41 = arith.constant dense<0.000000e+00> : vector<8x128xf32>
    %67 = tpu.matmul %61, %66, %cst_41 {dimension_numbers = #tpu.dot_dimension_numbers<[1], [0], [0], [1], [0, 0, 1, 1], [], []>} : vector<8x128xbf16>, vector<128x128xbf16>, vector<8x128xf32> -> vector<8x128xf32>
    %68 = arith.addf %65, %67 : vector<8x128xf32>
    %69 = math.tanh %68 : vector<8x128xf32>
    %70 = arith.truncf %69 : vector<8x128xf32> to vector<8x128xbf16>
    %c7_i32 = arith.constant 7 : i32
    %c8_i32_42 = arith.constant 8 : i32
    %71 = arith.muli %c7_i32, %c8_i32_42 : i32
    %72 = tpu.assume_multiple %71, 8 : i32
    %73 = arith.index_cast %72 : i32 to index
    %c0_43 = arith.constant 0 : index
    %74 = vector.load %arg8[%73, %c0_43] : memref<224x128xf32, #tpu.memory_space<vmem>>, vector<8x128xf32>
    %c0_44 = arith.constant 0 : index
    %c0_45 = arith.constant 0 : index
    %75 = vector.load %arg3[%c0_44, %c0_45] : memref<128x128xbf16, #tpu.memory_space<vmem>>, vector<128x128xbf16>
    %cst_46 = arith.constant dense<0.000000e+00> : vector<8x128xf32>
    %76 = tpu.matmul %70, %75, %cst_46 {dimension_numbers = #tpu.dot_dimension_numbers<[1], [0], [0], [1], [0, 0, 1, 1], [], []>} : vector<8x128xbf16>, vector<128x128xbf16>, vector<8x128xf32> -> vector<8x128xf32>
    %77 = arith.addf %74, %76 : vector<8x128xf32>
    %78 = math.tanh %77 : vector<8x128xf32>
    %79 = arith.truncf %78 : vector<8x128xf32> to vector<8x128xbf16>
    %c8_i32_47 = arith.constant 8 : i32
    %c8_i32_48 = arith.constant 8 : i32
    %80 = arith.muli %c8_i32_47, %c8_i32_48 : i32
    %81 = tpu.assume_multiple %80, 8 : i32
    %82 = arith.index_cast %81 : i32 to index
    %c0_49 = arith.constant 0 : index
    %83 = vector.load %arg8[%82, %c0_49] : memref<224x128xf32, #tpu.memory_space<vmem>>, vector<8x128xf32>
    %c0_50 = arith.constant 0 : index
    %c0_51 = arith.constant 0 : index
    %84 = vector.load %arg3[%c0_50, %c0_51] : memref<128x128xbf16, #tpu.memory_space<vmem>>, vector<128x128xbf16>
    %cst_52 = arith.constant dense<0.000000e+00> : vector<8x128xf32>
    %85 = tpu.matmul %79, %84, %cst_52 {dimension_numbers = #tpu.dot_dimension_numbers<[1], [0], [0], [1], [0, 0, 1, 1], [], []>} : vector<8x128xbf16>, vector<128x128xbf16>, vector<8x128xf32> -> vector<8x128xf32>
    %86 = arith.addf %83, %85 : vector<8x128xf32>
    %87 = math.tanh %86 : vector<8x128xf32>
    %88 = arith.truncf %87 : vector<8x128xf32> to vector<8x128xbf16>
    %c9_i32 = arith.constant 9 : i32
    %c8_i32_53 = arith.constant 8 : i32
    %89 = arith.muli %c9_i32, %c8_i32_53 : i32
    %90 = tpu.assume_multiple %89, 8 : i32
    %91 = arith.index_cast %90 : i32 to index
    %c0_54 = arith.constant 0 : index
    %92 = vector.load %arg8[%91, %c0_54] : memref<224x128xf32, #tpu.memory_space<vmem>>, vector<8x128xf32>
    %c0_55 = arith.constant 0 : index
    %c0_56 = arith.constant 0 : index
    %93 = vector.load %arg3[%c0_55, %c0_56] : memref<128x128xbf16, #tpu.memory_space<vmem>>, vector<128x128xbf16>
    %cst_57 = arith.constant dense<0.000000e+00> : vector<8x128xf32>
    %94 = tpu.matmul %88, %93, %cst_57 {dimension_numbers = #tpu.dot_dimension_numbers<[1], [0], [0], [1], [0, 0, 1, 1], [], []>} : vector<8x128xbf16>, vector<128x128xbf16>, vector<8x128xf32> -> vector<8x128xf32>
    %95 = arith.addf %92, %94 : vector<8x128xf32>
    %96 = math.tanh %95 : vector<8x128xf32>
    %97 = arith.truncf %96 : vector<8x128xf32> to vector<8x128xbf16>
    %c10_i32 = arith.constant 10 : i32
    %c8_i32_58 = arith.constant 8 : i32
    %98 = arith.muli %c10_i32, %c8_i32_58 : i32
    %99 = tpu.assume_multiple %98, 8 : i32
    %100 = arith.index_cast %99 : i32 to index
    %c0_59 = arith.constant 0 : index
    %101 = vector.load %arg8[%100, %c0_59] : memref<224x128xf32, #tpu.memory_space<vmem>>, vector<8x128xf32>
    %c0_60 = arith.constant 0 : index
    %c0_61 = arith.constant 0 : index
    %102 = vector.load %arg3[%c0_60, %c0_61] : memref<128x128xbf16, #tpu.memory_space<vmem>>, vector<128x128xbf16>
    %cst_62 = arith.constant dense<0.000000e+00> : vector<8x128xf32>
    %103 = tpu.matmul %97, %102, %cst_62 {dimension_numbers = #tpu.dot_dimension_numbers<[1], [0], [0], [1], [0, 0, 1, 1], [], []>} : vector<8x128xbf16>, vector<128x128xbf16>, vector<8x128xf32> -> vector<8x128xf32>
    %104 = arith.addf %101, %103 : vector<8x128xf32>
    %105 = math.tanh %104 : vector<8x128xf32>
    %106 = arith.truncf %105 : vector<8x128xf32> to vector<8x128xbf16>
    %c11_i32 = arith.constant 11 : i32
    %c8_i32_63 = arith.constant 8 : i32
    %107 = arith.muli %c11_i32, %c8_i32_63 : i32
    %108 = tpu.assume_multiple %107, 8 : i32
    %109 = arith.index_cast %108 : i32 to index
    %c0_64 = arith.constant 0 : index
    %110 = vector.load %arg8[%109, %c0_64] : memref<224x128xf32, #tpu.memory_space<vmem>>, vector<8x128xf32>
    %c0_65 = arith.constant 0 : index
    %c0_66 = arith.constant 0 : index
    %111 = vector.load %arg3[%c0_65, %c0_66] : memref<128x128xbf16, #tpu.memory_space<vmem>>, vector<128x128xbf16>
    %cst_67 = arith.constant dense<0.000000e+00> : vector<8x128xf32>
    %112 = tpu.matmul %106, %111, %cst_67 {dimension_numbers = #tpu.dot_dimension_numbers<[1], [0], [0], [1], [0, 0, 1, 1], [], []>} : vector<8x128xbf16>, vector<128x128xbf16>, vector<8x128xf32> -> vector<8x128xf32>
    %113 = arith.addf %110, %112 : vector<8x128xf32>
    %114 = math.tanh %113 : vector<8x128xf32>
    %115 = arith.truncf %114 : vector<8x128xf32> to vector<8x128xbf16>
    %c12_i32 = arith.constant 12 : i32
    %c8_i32_68 = arith.constant 8 : i32
    %116 = arith.muli %c12_i32, %c8_i32_68 : i32
    %117 = tpu.assume_multiple %116, 8 : i32
    %118 = arith.index_cast %117 : i32 to index
    %c0_69 = arith.constant 0 : index
    %119 = vector.load %arg8[%118, %c0_69] : memref<224x128xf32, #tpu.memory_space<vmem>>, vector<8x128xf32>
    %c0_70 = arith.constant 0 : index
    %c0_71 = arith.constant 0 : index
    %120 = vector.load %arg3[%c0_70, %c0_71] : memref<128x128xbf16, #tpu.memory_space<vmem>>, vector<128x128xbf16>
    %cst_72 = arith.constant dense<0.000000e+00> : vector<8x128xf32>
    %121 = tpu.matmul %115, %120, %cst_72 {dimension_numbers = #tpu.dot_dimension_numbers<[1], [0], [0], [1], [0, 0, 1, 1], [], []>} : vector<8x128xbf16>, vector<128x128xbf16>, vector<8x128xf32> -> vector<8x128xf32>
    %122 = arith.addf %119, %121 : vector<8x128xf32>
    %123 = math.tanh %122 : vector<8x128xf32>
    %124 = arith.truncf %123 : vector<8x128xf32> to vector<8x128xbf16>
    %c13_i32 = arith.constant 13 : i32
    %c8_i32_73 = arith.constant 8 : i32
    %125 = arith.muli %c13_i32, %c8_i32_73 : i32
    %126 = tpu.assume_multiple %125, 8 : i32
    %127 = arith.index_cast %126 : i32 to index
    %c0_74 = arith.constant 0 : index
    %128 = vector.load %arg8[%127, %c0_74] : memref<224x128xf32, #tpu.memory_space<vmem>>, vector<8x128xf32>
    %c0_75 = arith.constant 0 : index
    %c0_76 = arith.constant 0 : index
    %129 = vector.load %arg3[%c0_75, %c0_76] : memref<128x128xbf16, #tpu.memory_space<vmem>>, vector<128x128xbf16>
    %cst_77 = arith.constant dense<0.000000e+00> : vector<8x128xf32>
    %130 = tpu.matmul %124, %129, %cst_77 {dimension_numbers = #tpu.dot_dimension_numbers<[1], [0], [0], [1], [0, 0, 1, 1], [], []>} : vector<8x128xbf16>, vector<128x128xbf16>, vector<8x128xf32> -> vector<8x128xf32>
    %131 = arith.addf %128, %130 : vector<8x128xf32>
    %132 = math.tanh %131 : vector<8x128xf32>
    %133 = arith.truncf %132 : vector<8x128xf32> to vector<8x128xbf16>
    %c14_i32 = arith.constant 14 : i32
    %c8_i32_78 = arith.constant 8 : i32
    %134 = arith.muli %c14_i32, %c8_i32_78 : i32
    %135 = tpu.assume_multiple %134, 8 : i32
    %136 = arith.index_cast %135 : i32 to index
    %c0_79 = arith.constant 0 : index
    %137 = vector.load %arg8[%136, %c0_79] : memref<224x128xf32, #tpu.memory_space<vmem>>, vector<8x128xf32>
    %c0_80 = arith.constant 0 : index
    %c0_81 = arith.constant 0 : index
    %138 = vector.load %arg3[%c0_80, %c0_81] : memref<128x128xbf16, #tpu.memory_space<vmem>>, vector<128x128xbf16>
    %cst_82 = arith.constant dense<0.000000e+00> : vector<8x128xf32>
    %139 = tpu.matmul %133, %138, %cst_82 {dimension_numbers = #tpu.dot_dimension_numbers<[1], [0], [0], [1], [0, 0, 1, 1], [], []>} : vector<8x128xbf16>, vector<128x128xbf16>, vector<8x128xf32> -> vector<8x128xf32>
    %140 = arith.addf %137, %139 : vector<8x128xf32>
    %141 = math.tanh %140 : vector<8x128xf32>
    %142 = arith.truncf %141 : vector<8x128xf32> to vector<8x128xbf16>
    %c15_i32 = arith.constant 15 : i32
    %c8_i32_83 = arith.constant 8 : i32
    %143 = arith.muli %c15_i32, %c8_i32_83 : i32
    %144 = tpu.assume_multiple %143, 8 : i32
    %145 = arith.index_cast %144 : i32 to index
    %c0_84 = arith.constant 0 : index
    %146 = vector.load %arg8[%145, %c0_84] : memref<224x128xf32, #tpu.memory_space<vmem>>, vector<8x128xf32>
    %c0_85 = arith.constant 0 : index
    %c0_86 = arith.constant 0 : index
    %147 = vector.load %arg3[%c0_85, %c0_86] : memref<128x128xbf16, #tpu.memory_space<vmem>>, vector<128x128xbf16>
    %cst_87 = arith.constant dense<0.000000e+00> : vector<8x128xf32>
    %148 = tpu.matmul %142, %147, %cst_87 {dimension_numbers = #tpu.dot_dimension_numbers<[1], [0], [0], [1], [0, 0, 1, 1], [], []>} : vector<8x128xbf16>, vector<128x128xbf16>, vector<8x128xf32> -> vector<8x128xf32>
    %149 = arith.addf %146, %148 : vector<8x128xf32>
    %150 = math.tanh %149 : vector<8x128xf32>
    %151 = arith.truncf %150 : vector<8x128xf32> to vector<8x128xbf16>
    %c16_i32 = arith.constant 16 : i32
    %c8_i32_88 = arith.constant 8 : i32
    %152 = arith.muli %c16_i32, %c8_i32_88 : i32
    %153 = tpu.assume_multiple %152, 8 : i32
    %154 = arith.index_cast %153 : i32 to index
    %c0_89 = arith.constant 0 : index
    %155 = vector.load %arg8[%154, %c0_89] : memref<224x128xf32, #tpu.memory_space<vmem>>, vector<8x128xf32>
    %c0_90 = arith.constant 0 : index
    %c0_91 = arith.constant 0 : index
    %156 = vector.load %arg3[%c0_90, %c0_91] : memref<128x128xbf16, #tpu.memory_space<vmem>>, vector<128x128xbf16>
    %cst_92 = arith.constant dense<0.000000e+00> : vector<8x128xf32>
    %157 = tpu.matmul %151, %156, %cst_92 {dimension_numbers = #tpu.dot_dimension_numbers<[1], [0], [0], [1], [0, 0, 1, 1], [], []>} : vector<8x128xbf16>, vector<128x128xbf16>, vector<8x128xf32> -> vector<8x128xf32>
    %158 = arith.addf %155, %157 : vector<8x128xf32>
    %159 = math.tanh %158 : vector<8x128xf32>
    %160 = arith.truncf %159 : vector<8x128xf32> to vector<8x128xbf16>
    %c17_i32 = arith.constant 17 : i32
    %c8_i32_93 = arith.constant 8 : i32
    %161 = arith.muli %c17_i32, %c8_i32_93 : i32
    %162 = tpu.assume_multiple %161, 8 : i32
    %163 = arith.index_cast %162 : i32 to index
    %c0_94 = arith.constant 0 : index
    %164 = vector.load %arg8[%163, %c0_94] : memref<224x128xf32, #tpu.memory_space<vmem>>, vector<8x128xf32>
    %c0_95 = arith.constant 0 : index
    %c0_96 = arith.constant 0 : index
    %165 = vector.load %arg3[%c0_95, %c0_96] : memref<128x128xbf16, #tpu.memory_space<vmem>>, vector<128x128xbf16>
    %cst_97 = arith.constant dense<0.000000e+00> : vector<8x128xf32>
    %166 = tpu.matmul %160, %165, %cst_97 {dimension_numbers = #tpu.dot_dimension_numbers<[1], [0], [0], [1], [0, 0, 1, 1], [], []>} : vector<8x128xbf16>, vector<128x128xbf16>, vector<8x128xf32> -> vector<8x128xf32>
    %167 = arith.addf %164, %166 : vector<8x128xf32>
    %168 = math.tanh %167 : vector<8x128xf32>
    %169 = arith.truncf %168 : vector<8x128xf32> to vector<8x128xbf16>
    %c18_i32 = arith.constant 18 : i32
    %c8_i32_98 = arith.constant 8 : i32
    %170 = arith.muli %c18_i32, %c8_i32_98 : i32
    %171 = tpu.assume_multiple %170, 8 : i32
    %172 = arith.index_cast %171 : i32 to index
    %c0_99 = arith.constant 0 : index
    %173 = vector.load %arg8[%172, %c0_99] : memref<224x128xf32, #tpu.memory_space<vmem>>, vector<8x128xf32>
    %c0_100 = arith.constant 0 : index
    %c0_101 = arith.constant 0 : index
    %174 = vector.load %arg3[%c0_100, %c0_101] : memref<128x128xbf16, #tpu.memory_space<vmem>>, vector<128x128xbf16>
    %cst_102 = arith.constant dense<0.000000e+00> : vector<8x128xf32>
    %175 = tpu.matmul %169, %174, %cst_102 {dimension_numbers = #tpu.dot_dimension_numbers<[1], [0], [0], [1], [0, 0, 1, 1], [], []>} : vector<8x128xbf16>, vector<128x128xbf16>, vector<8x128xf32> -> vector<8x128xf32>
    %176 = arith.addf %173, %175 : vector<8x128xf32>
    %177 = math.tanh %176 : vector<8x128xf32>
    %178 = arith.truncf %177 : vector<8x128xf32> to vector<8x128xbf16>
    %c19_i32 = arith.constant 19 : i32
    %c8_i32_103 = arith.constant 8 : i32
    %179 = arith.muli %c19_i32, %c8_i32_103 : i32
    %180 = tpu.assume_multiple %179, 8 : i32
    %181 = arith.index_cast %180 : i32 to index
    %c0_104 = arith.constant 0 : index
    %182 = vector.load %arg8[%181, %c0_104] : memref<224x128xf32, #tpu.memory_space<vmem>>, vector<8x128xf32>
    %c0_105 = arith.constant 0 : index
    %c0_106 = arith.constant 0 : index
    %183 = vector.load %arg3[%c0_105, %c0_106] : memref<128x128xbf16, #tpu.memory_space<vmem>>, vector<128x128xbf16>
    %cst_107 = arith.constant dense<0.000000e+00> : vector<8x128xf32>
    %184 = tpu.matmul %178, %183, %cst_107 {dimension_numbers = #tpu.dot_dimension_numbers<[1], [0], [0], [1], [0, 0, 1, 1], [], []>} : vector<8x128xbf16>, vector<128x128xbf16>, vector<8x128xf32> -> vector<8x128xf32>
    %185 = arith.addf %182, %184 : vector<8x128xf32>
    %186 = math.tanh %185 : vector<8x128xf32>
    %187 = arith.truncf %186 : vector<8x128xf32> to vector<8x128xbf16>
    %c20_i32 = arith.constant 20 : i32
    %c8_i32_108 = arith.constant 8 : i32
    %188 = arith.muli %c20_i32, %c8_i32_108 : i32
    %189 = tpu.assume_multiple %188, 8 : i32
    %190 = arith.index_cast %189 : i32 to index
    %c0_109 = arith.constant 0 : index
    %191 = vector.load %arg8[%190, %c0_109] : memref<224x128xf32, #tpu.memory_space<vmem>>, vector<8x128xf32>
    %c0_110 = arith.constant 0 : index
    %c0_111 = arith.constant 0 : index
    %192 = vector.load %arg3[%c0_110, %c0_111] : memref<128x128xbf16, #tpu.memory_space<vmem>>, vector<128x128xbf16>
    %cst_112 = arith.constant dense<0.000000e+00> : vector<8x128xf32>
    %193 = tpu.matmul %187, %192, %cst_112 {dimension_numbers = #tpu.dot_dimension_numbers<[1], [0], [0], [1], [0, 0, 1, 1], [], []>} : vector<8x128xbf16>, vector<128x128xbf16>, vector<8x128xf32> -> vector<8x128xf32>
    %194 = arith.addf %191, %193 : vector<8x128xf32>
    %195 = math.tanh %194 : vector<8x128xf32>
    %196 = arith.truncf %195 : vector<8x128xf32> to vector<8x128xbf16>
    %c21_i32 = arith.constant 21 : i32
    %c8_i32_113 = arith.constant 8 : i32
    %197 = arith.muli %c21_i32, %c8_i32_113 : i32
    %198 = tpu.assume_multiple %197, 8 : i32
    %199 = arith.index_cast %198 : i32 to index
    %c0_114 = arith.constant 0 : index
    %200 = vector.load %arg8[%199, %c0_114] : memref<224x128xf32, #tpu.memory_space<vmem>>, vector<8x128xf32>
    %c0_115 = arith.constant 0 : index
    %c0_116 = arith.constant 0 : index
    %201 = vector.load %arg3[%c0_115, %c0_116] : memref<128x128xbf16, #tpu.memory_space<vmem>>, vector<128x128xbf16>
    %cst_117 = arith.constant dense<0.000000e+00> : vector<8x128xf32>
    %202 = tpu.matmul %196, %201, %cst_117 {dimension_numbers = #tpu.dot_dimension_numbers<[1], [0], [0], [1], [0, 0, 1, 1], [], []>} : vector<8x128xbf16>, vector<128x128xbf16>, vector<8x128xf32> -> vector<8x128xf32>
    %203 = arith.addf %200, %202 : vector<8x128xf32>
    %204 = math.tanh %203 : vector<8x128xf32>
    %205 = arith.truncf %204 : vector<8x128xf32> to vector<8x128xbf16>
    %c22_i32 = arith.constant 22 : i32
    %c8_i32_118 = arith.constant 8 : i32
    %206 = arith.muli %c22_i32, %c8_i32_118 : i32
    %207 = tpu.assume_multiple %206, 8 : i32
    %208 = arith.index_cast %207 : i32 to index
    %c0_119 = arith.constant 0 : index
    %209 = vector.load %arg8[%208, %c0_119] : memref<224x128xf32, #tpu.memory_space<vmem>>, vector<8x128xf32>
    %c0_120 = arith.constant 0 : index
    %c0_121 = arith.constant 0 : index
    %210 = vector.load %arg3[%c0_120, %c0_121] : memref<128x128xbf16, #tpu.memory_space<vmem>>, vector<128x128xbf16>
    %cst_122 = arith.constant dense<0.000000e+00> : vector<8x128xf32>
    %211 = tpu.matmul %205, %210, %cst_122 {dimension_numbers = #tpu.dot_dimension_numbers<[1], [0], [0], [1], [0, 0, 1, 1], [], []>} : vector<8x128xbf16>, vector<128x128xbf16>, vector<8x128xf32> -> vector<8x128xf32>
    %212 = arith.addf %209, %211 : vector<8x128xf32>
    %213 = math.tanh %212 : vector<8x128xf32>
    %214 = arith.truncf %213 : vector<8x128xf32> to vector<8x128xbf16>
    %c23_i32 = arith.constant 23 : i32
    %c8_i32_123 = arith.constant 8 : i32
    %215 = arith.muli %c23_i32, %c8_i32_123 : i32
    %216 = tpu.assume_multiple %215, 8 : i32
    %217 = arith.index_cast %216 : i32 to index
    %c0_124 = arith.constant 0 : index
    %218 = vector.load %arg8[%217, %c0_124] : memref<224x128xf32, #tpu.memory_space<vmem>>, vector<8x128xf32>
    %c0_125 = arith.constant 0 : index
    %c0_126 = arith.constant 0 : index
    %219 = vector.load %arg3[%c0_125, %c0_126] : memref<128x128xbf16, #tpu.memory_space<vmem>>, vector<128x128xbf16>
    %cst_127 = arith.constant dense<0.000000e+00> : vector<8x128xf32>
    %220 = tpu.matmul %214, %219, %cst_127 {dimension_numbers = #tpu.dot_dimension_numbers<[1], [0], [0], [1], [0, 0, 1, 1], [], []>} : vector<8x128xbf16>, vector<128x128xbf16>, vector<8x128xf32> -> vector<8x128xf32>
    %221 = arith.addf %218, %220 : vector<8x128xf32>
    %222 = math.tanh %221 : vector<8x128xf32>
    %223 = arith.truncf %222 : vector<8x128xf32> to vector<8x128xbf16>
    %c24_i32 = arith.constant 24 : i32
    %c8_i32_128 = arith.constant 8 : i32
    %224 = arith.muli %c24_i32, %c8_i32_128 : i32
    %225 = tpu.assume_multiple %224, 8 : i32
    %226 = arith.index_cast %225 : i32 to index
    %c0_129 = arith.constant 0 : index
    %227 = vector.load %arg8[%226, %c0_129] : memref<224x128xf32, #tpu.memory_space<vmem>>, vector<8x128xf32>
    %c0_130 = arith.constant 0 : index
    %c0_131 = arith.constant 0 : index
    %228 = vector.load %arg3[%c0_130, %c0_131] : memref<128x128xbf16, #tpu.memory_space<vmem>>, vector<128x128xbf16>
    %cst_132 = arith.constant dense<0.000000e+00> : vector<8x128xf32>
    %229 = tpu.matmul %223, %228, %cst_132 {dimension_numbers = #tpu.dot_dimension_numbers<[1], [0], [0], [1], [0, 0, 1, 1], [], []>} : vector<8x128xbf16>, vector<128x128xbf16>, vector<8x128xf32> -> vector<8x128xf32>
    %230 = arith.addf %227, %229 : vector<8x128xf32>
    %231 = math.tanh %230 : vector<8x128xf32>
    %232 = arith.truncf %231 : vector<8x128xf32> to vector<8x128xbf16>
    %c25_i32 = arith.constant 25 : i32
    %c8_i32_133 = arith.constant 8 : i32
    %233 = arith.muli %c25_i32, %c8_i32_133 : i32
    %234 = tpu.assume_multiple %233, 8 : i32
    %235 = arith.index_cast %234 : i32 to index
    %c0_134 = arith.constant 0 : index
    %236 = vector.load %arg8[%235, %c0_134] : memref<224x128xf32, #tpu.memory_space<vmem>>, vector<8x128xf32>
    %c0_135 = arith.constant 0 : index
    %c0_136 = arith.constant 0 : index
    %237 = vector.load %arg3[%c0_135, %c0_136] : memref<128x128xbf16, #tpu.memory_space<vmem>>, vector<128x128xbf16>
    %cst_137 = arith.constant dense<0.000000e+00> : vector<8x128xf32>
    %238 = tpu.matmul %232, %237, %cst_137 {dimension_numbers = #tpu.dot_dimension_numbers<[1], [0], [0], [1], [0, 0, 1, 1], [], []>} : vector<8x128xbf16>, vector<128x128xbf16>, vector<8x128xf32> -> vector<8x128xf32>
    %239 = arith.addf %236, %238 : vector<8x128xf32>
    %240 = math.tanh %239 : vector<8x128xf32>
    %241 = arith.truncf %240 : vector<8x128xf32> to vector<8x128xbf16>
    %c26_i32 = arith.constant 26 : i32
    %c8_i32_138 = arith.constant 8 : i32
    %242 = arith.muli %c26_i32, %c8_i32_138 : i32
    %243 = tpu.assume_multiple %242, 8 : i32
    %244 = arith.index_cast %243 : i32 to index
    %c0_139 = arith.constant 0 : index
    %245 = vector.load %arg8[%244, %c0_139] : memref<224x128xf32, #tpu.memory_space<vmem>>, vector<8x128xf32>
    %c0_140 = arith.constant 0 : index
    %c0_141 = arith.constant 0 : index
    %246 = vector.load %arg3[%c0_140, %c0_141] : memref<128x128xbf16, #tpu.memory_space<vmem>>, vector<128x128xbf16>
    %cst_142 = arith.constant dense<0.000000e+00> : vector<8x128xf32>
    %247 = tpu.matmul %241, %246, %cst_142 {dimension_numbers = #tpu.dot_dimension_numbers<[1], [0], [0], [1], [0, 0, 1, 1], [], []>} : vector<8x128xbf16>, vector<128x128xbf16>, vector<8x128xf32> -> vector<8x128xf32>
    %248 = arith.addf %245, %247 : vector<8x128xf32>
    %249 = math.tanh %248 : vector<8x128xf32>
    %250 = arith.truncf %249 : vector<8x128xf32> to vector<8x128xbf16>
    %c27_i32 = arith.constant 27 : i32
    %c8_i32_143 = arith.constant 8 : i32
    %251 = arith.muli %c27_i32, %c8_i32_143 : i32
    %252 = tpu.assume_multiple %251, 8 : i32
    %253 = arith.index_cast %252 : i32 to index
    %c0_144 = arith.constant 0 : index
    %254 = vector.load %arg8[%253, %c0_144] : memref<224x128xf32, #tpu.memory_space<vmem>>, vector<8x128xf32>
    %c0_145 = arith.constant 0 : index
    %c0_146 = arith.constant 0 : index
    %255 = vector.load %arg3[%c0_145, %c0_146] : memref<128x128xbf16, #tpu.memory_space<vmem>>, vector<128x128xbf16>
    %cst_147 = arith.constant dense<0.000000e+00> : vector<8x128xf32>
    %256 = tpu.matmul %250, %255, %cst_147 {dimension_numbers = #tpu.dot_dimension_numbers<[1], [0], [0], [1], [0, 0, 1, 1], [], []>} : vector<8x128xbf16>, vector<128x128xbf16>, vector<8x128xf32> -> vector<8x128xf32>
    %257 = arith.addf %254, %256 : vector<8x128xf32>
    %258 = math.tanh %257 : vector<8x128xf32>
    %259 = arith.truncf %258 : vector<8x128xf32> to vector<8x128xbf16>
    %c28_i32 = arith.constant 28 : i32
    %c0_148 = arith.constant 0 : index
    %c0_149 = arith.constant 0 : index
    %260 = vector.load %arg5[%c0_148, %c0_149] : memref<128x128xbf16, #tpu.memory_space<vmem>>, vector<128x128xbf16>
    %cst_150 = arith.constant dense<0.000000e+00> : vector<8x128xf32>
    %261 = tpu.matmul %259, %260, %cst_150 {dimension_numbers = #tpu.dot_dimension_numbers<[1], [0], [0], [1], [0, 0, 1, 1], [], []>} : vector<8x128xbf16>, vector<128x128xbf16>, vector<8x128xf32> -> vector<8x128xf32>
    %c0_151 = arith.constant 0 : index
    %c0_152 = arith.constant 0 : index
    %262 = vector.load %arg6[%c0_151, %c0_152] : memref<1x128xf32, #tpu.memory_space<vmem>>, vector<1x128xf32>
    %263 = vector.broadcast %262 : vector<1x128xf32> to vector<8x128xf32>
    %264 = arith.addf %261, %263 : vector<8x128xf32>
    %c0_153 = arith.constant 0 : index
    %c0_154 = arith.constant 0 : index
    %265 = vector.load %arg7[%c0_153, %c0_154] : memref<8x128xf32, #tpu.memory_space<vmem>>, vector<8x128xf32>
    tpu.vector_store %arg7[%c0_153, %c0_154], %264 {strides = array<i32>} : memref<8x128xf32, #tpu.memory_space<vmem>>, vector<8x128xf32>,
    return
  }
  func.func @transform_0(%arg0: i32) -> (i32, i32) {
    %c0_i32 = arith.constant 0 : i32
    %c0_i32_0 = arith.constant 0 : i32
    %c0_i32_1 = arith.constant 0 : i32
    return %c0_i32, %c0_i32_0 : i32, i32
  }
  func.func @transform_1(%arg0: i32) -> (i32, i32) {
    %c0_i32 = arith.constant 0 : i32
    %c0_i32_0 = arith.constant 0 : i32
    %c0_i32_1 = arith.constant 0 : i32
    return %c0_i32, %c0_i32_0 : i32, i32
  }
  func.func @transform_2(%arg0: i32) -> (i32, i32) {
    %c0_i32 = arith.constant 0 : i32
    %c0_i32_0 = arith.constant 0 : i32
    %c0_i32_1 = arith.constant 0 : i32
    return %c0_i32, %c0_i32_0 : i32, i32
  }
  func.func @transform_3(%arg0: i32) -> (i32, i32) {
    %c0_i32 = arith.constant 0 : i32
    %c0_i32_0 = arith.constant 0 : i32
    %c0_i32_1 = arith.constant 0 : i32
    return %c0_i32, %c0_i32_0 : i32, i32
  }
  func.func @transform_4(%arg0: i32) -> (i32, i32) {
    %c0_i32 = arith.constant 0 : i32
    %c0_i32_0 = arith.constant 0 : i32
    %c0_i32_1 = arith.constant 0 : i32
    return %c0_i32, %c0_i32_0 : i32, i32
  }
  func.func @transform_5(%arg0: i32) -> (i32, i32) {
    %c0_i32 = arith.constant 0 : i32
    %c0_i32_0 = arith.constant 0 : i32
    %c0_i32_1 = arith.constant 0 : i32
    return %c0_i32, %c0_i32_0 : i32, i32
  }
  func.func @transform_6(%arg0: i32) -> (i32, i32) {
    %c0_i32 = arith.constant 0 : i32
    %c0_i32_0 = arith.constant 0 : i32
    %c0_i32_1 = arith.constant 0 : i32
    return %c0_i32, %c0_i32_0 : i32, i32
  }
}

</mosaic_0001>

<bundles_post_ra>
// kernel: net_forward.1
= control target key start
LH: loop header
LB: loop body
LE: loop exit
PB: predicated region body
PF: predicated region fallthrough
CT: control target
= control target key end

     0   :  { %v2877_v1 = vmov 0.0   ;;  %vm2878_vm0 = vmmov 0   ;;  %vm188_vm1 = vcmask 1045504   ;;  %vm145_vm2 = vcmask 228352   ;;  %s3727_s0 = inlined_call_operand.vmem [shape: bf16[224,28], index: 0, kind: input, shape index: {}]   ;;  %s3728_s1 = inlined_call_operand.vmem [shape: bf16[28,128], index: 1, kind: input, shape index: {}]   ;;  %s3729_s2 = inlined_call_operand.vmem [shape: bf16[128,128], index: 2, kind: input, shape index: {}]   ;;  %s3730_s3 = inlined_call_operand.vmem [shape: f32[1,128], index: 3, kind: input, shape index: {}]   ;;  %s3731_s4 = inlined_call_operand.vmem [shape: bf16[128,128], index: 4, kind: input, shape index: {}]   ;;  %s3732_s5 = inlined_call_operand.vmem [shape: f32[1,128], index: 5, kind: input, shape index: {}]   ;;  %s3733_s6 = inlined_call_operand.hbm [shape: f32[8,128], index: 6, kind: output, shape index: {}]  }
   0x1   :  { %v2919_v0 = vld [vmem:[%s3729_s2] sm:$0xff]   ;;  %2171 = vmatprep.subr.bf16.mxu1 %v2877_v1  ;;  %v2926_v2 = vld [vmem:[%s3729_s2 + $0x8] sm:$0xff]   ;;  %2187 = vmatprep.mubr.msk.bf16.mxu1 %vm2878_vm0, %v2877_v1  ;;  %v2938_v4 = vld [vmem:[%s3729_s2 + $0x10] sm:$0xff]  }
   0x2   :  { %2172 = vmatpush3.bf16.msra.mxu1 %v2919_v0  ;;  %v2761_v3 = vld [vmem:[%s3728_s1] sm:$0xff]   ;;  %v2763_v5 = vld [vmem:[%s3728_s1 + $0x8] sm:$0x3f]   ;;  %v2951_v8 = vld [vmem:[%s3729_s2 + $0x18] sm:$0xff]  }
   0x3   :  { %2173 = vmatprep.subr.bf16.mxu1 %v2877_v1  ;;  %2139 = vmatprep.subr.bf16.mxu0 %v2761_v3  ;;  %v2764_v6 = vld [vmem:[%s3727_s0] sm:$0xff]   ;;  %v190_v7 = vsel %vm188_vm1, %v2763_v5, 0  ;;  %v2766_v9 = vld [vmem:[%s3727_s0 + $0x8] sm:$0xff]   ;;  %v2768_v10 = vld [vmem:[%s3727_s0 + $0x10] sm:$0xff]  }
   0x4   :  { %2140 = vmatpush3.bf16.msra.mxu0 %v2761_v3  ;;  %2143 = vmatprep.mubr.msk.bf16.mxu0 %vm145_vm2, %v2764_v6  ;;  %v2966_v11 = vld [vmem:[%s3729_s2 + $0x20] sm:$0xff]   ;;  %v2975_v12 = vld [vmem:[%s3729_s2 + $0x28] sm:$0xff]   ;;  %v2769_v13 = vld [vmem:[%s3727_s0 + $0x18] sm:$0xff]  }
   0x5   :  { %2751 = vmatprep.subr.msk.bf16.mxu0 %vm188_vm1, %v2763_v5  ;;  %v2770_v14 = vld [vmem:[%s3727_s0 + $0x20] sm:$0xff]   ;;  %v2989_v15 = vld [vmem:[%s3729_s2 + $0x30] sm:$0xff]   ;;  %v2999_v16 = vld [vmem:[%s3729_s2 + $0x38] sm:$0xff]  }
   0x6   :  { %2174 = vmatpush3.bf16.msra.mxu1 %v2926_v2  ;;  %v2771_v17 = vld [vmem:[%s3727_s0 + $0x28] sm:$0xff]   ;;  %v2772_v18 = vld [vmem:[%s3727_s0 + $0x30] sm:$0xff]  }
   0x7   :  { %2175 = vmatprep.subr.bf16.mxu1 %v2877_v1 }
   0x8   :  { %2142 = vmatpush3.bf16.msra.mxu0 %v190_v7 }
   0x9   :  { %2191 = vmatprep.subr.bf16.mxu0 %v2877_v1 }
   0xa   :  { %2176 = vmatpush3.bf16.msra.mxu1 %v2938_v4 }
   0xb   :  { %2177 = vmatprep.subr.bf16.mxu1 %v2877_v1  ;;  %2144 = vmatmul.mubr.msk.bf16.vlgmr.msra.gmra.mrb[0].mxu0 %vm145_vm2, %v2766_v9 }
   0xc   :  { %2192 = vmatpush3.bf16.msra.mxu0 %v2919_v0  ;;  %2147 = vmatprep.mubr.msk.bf16.mxu0 %vm145_vm2, %v2768_v10 }
   0xd   :  { %2193 = vmatprep.subr.bf16.mxu0 %v2877_v1 }
   0xe   :  { %2178 = vmatpush3.bf16.msra.mxu1 %v2951_v8 }
   0xf   :  { %2179 = vmatprep.subr.bf16.mxu1 %v2877_v1 }
  0x10   :  { %2194 = vmatpush3.bf16.msra.mxu0 %v2926_v2 }
  0x11   :  { %2195 = vmatprep.subr.bf16.mxu0 %v2877_v1 }
  0x12   :  { %2180 = vmatpush3.bf16.msra.mxu1 %v2966_v11 }
  0x13   :  { %2181 = vmatprep.subr.bf16.mxu1 %v2877_v1  ;;  %2148 = vmatmul.mubr.msk.bf16.gmra.mrb[4].mxu0 %vm145_vm2, %v2769_v13 }
  0x14   :  { %2151 = vmatprep.mubr.msk.bf16.mxu0 %vm145_vm2, %v2770_v14  ;;  %2196 = vmatpush3.bf16.msra.mxu0 %v2938_v4 }
  0x15   :  { %2197 = vmatprep.subr.bf16.mxu0 %v2877_v1 }
  0x16   :  { %2182 = vmatpush3.bf16.msra.mxu1 %v2975_v12 }
  0x17   :  { %2183 = vmatprep.subr.bf16.mxu1 %v2877_v1 }
  0x18   :  { %2198 = vmatpush3.bf16.msra.mxu0 %v2951_v8 }
  0x1a   :  { %2184 = vmatpush3.bf16.msra.mxu1 %v2989_v15 }
  0x1b   :  { %2185 = vmatprep.subr.bf16.mxu1 %v2877_v1 }
  0x1c   :  { %11 = vsyncpa [#allocation4], 0  ;;  %2199 = vmatprep.subr.bf16.mxu0 %v2877_v1  ;;  %2152 = vmatmul.mubr.msk.bf16.gmra.mrb[8].mxu0 %vm145_vm2, %v2771_v17  ;;  %v2879_v19 = vmov 0   ;;  %v2773_v20 = vld [vmem:[%s3727_s0 + $0x38] sm:$0xff]   ;;  %v2774_v21 = vld [vmem:[%s3727_s0 + $0x40] sm:$0xff]   ;;  %s2880_s28 = smov [#allocation3]  }
  0x1d   :  { %2155 = vmatprep.mubr.msk.bf16.mxu0 %vm145_vm2, %v2772_v18  ;;  %2200 = vmatpush3.bf16.msra.mxu0 %v2966_v11  ;;  %v2775_v22 = vld [vmem:[%s3727_s0 + $0x48] sm:$0xff]   ;;  %v2776_v23 = vld [vmem:[%s3727_s0 + $0x50] sm:$0xff]   ;;  %v2777_v24 = vld [vmem:[%s3727_s0 + $0x58] sm:$0xff]   ;;  %s1806_s29 = sshll.u32 %s2880_s28, 4  ;;  %s1807_s29 = int_to_ptr.vmem [resolvable:$true] %s1806_s29 }
  0x1e   :  { %2186 = vmatpush3.bf16.msra.mxu1 %v2999_v16  ;;  %2201 = vmatprep.subr.bf16.mxu0 %v2877_v1  ;;  %v2778_v25 = vld [vmem:[%s3727_s0 + $0x60] sm:$0xff]   ;;  %v2779_v26 = vld [vmem:[%s3727_s0 + $0x68] sm:$0xff]   ;;  %p2858_p1 = scmp.lt.s32.totalorder %s1807_s29, %s1807_s29 }
  0x1f   :  { %2211 = vmatprep.subr.bf16.mxu1 %v2877_v1  ;;  %v3089_v35 = vld [vmem:[%s3730_s3] ss:$0 sm:$0xff] }
  0x21   :  { %2188 = vmatmul.mubr.bf16.vlgmr.msra.gmra.mrb[0].mxu1 %v2879_v19  ;;  %2202 = vmatpush3.bf16.msra.mxu0 %v2975_v12 }
  0x22   :  { %2212 = vmatpush3.bf16.msra.mxu1 %v2919_v0  ;;  %2227 = vmatprep.mubr.msk.bf16.mxu1 %vm2878_vm0, %v2877_v1 }
  0x23   :  { %2213 = vmatprep.subr.bf16.mxu1 %v2877_v1  ;;  %2203 = vmatprep.subr.bf16.mxu0 %v2877_v1 }
  0x24   :  { %2156 = vmatmul.mubr.msk.bf16.gmra.mrb[12].mxu0 %vm145_vm2, %v2773_v20 }
  0x25   :  { %2159 = vmatprep.mubr.msk.bf16.mxu0 %vm145_vm2, %v2774_v21  ;;  %2204 = vmatpush3.bf16.msra.mxu0 %v2989_v15 }
  0x26   :  { %2214 = vmatpush3.bf16.msra.mxu1 %v2926_v2  ;;  %2205 = vmatprep.subr.bf16.mxu0 %v2877_v1 }
  0x27   :  { %2215 = vmatprep.subr.bf16.mxu1 %v2877_v1 }
  0x29   :  { %2206 = vmatpush3.bf16.msra.mxu0 %v2999_v16 }
  0x2a   :  { %2216 = vmatpush3.bf16.msra.mxu1 %v2938_v4  ;;  %2231 = vmatprep.subr.bf16.mxu0 %v2877_v1 }
  0x2b   :  { %2217 = vmatprep.subr.bf16.mxu1 %v2877_v1 }
  0x2c   :  { %2160 = vmatmul.mubr.msk.bf16.gmra.mrb[16].mxu0 %vm145_vm2, %v2775_v22 }
  0x2d   :  { %2163 = vmatprep.mubr.msk.bf16.mxu0 %vm145_vm2, %v2776_v23 }
  0x2e   :  { %2218 = vmatpush3.bf16.msra.mxu1 %v2951_v8 }
  0x2f   :  { %2219 = vmatprep.subr.bf16.mxu1 %v2877_v1 }
  0x32   :  { %2220 = vmatpush3.bf16.msra.mxu1 %v2966_v11 }
  0x33   :  { %2221 = vmatprep.subr.bf16.mxu1 %v2877_v1 }
  0x34   :  { %2164 = vmatmul.mubr.msk.bf16.gmra.mrb[20].mxu0 %vm145_vm2, %v2777_v24 }
  0x35   :  { %2167 = vmatprep.mubr.msk.bf16.mxu0 %vm145_vm2, %v2778_v25 }
  0x36   :  { %2222 = vmatpush3.bf16.msra.mxu1 %v2975_v12 }
  0x37   :  { %2223 = vmatprep.subr.bf16.mxu1 %v2877_v1 }
  0x3a   :  { %2224 = vmatpush3.bf16.msra.mxu1 %v2989_v15 }
  0x3b   :  { %2225 = vmatprep.subr.bf16.mxu1 %v2877_v1 }
  0x3c   :  { %2168 = vmatmul.mubr.msk.bf16.gmra.mrb[24].mxu0 %vm145_vm2, %v2779_v26 }
  0x3d   :  { %2207 = vmatprep.mubr.msk.bf16.mxu0 %vm2878_vm0, %v2877_v1 }
  0x3e   :  { %2226 = vmatpush3.bf16.msra.mxu1 %v2999_v16 }
  0x3f   :  { %2251 = vmatprep.subr.bf16.mxu1 %v2877_v1 }
  0xde   :  { %v3074_v27 = vpop.f32.mrb[0].mxu0 }
  0xdf   :  { %v226_v28 = vpop.f32.mrb[1].mxu0  ;;  %v235_v17 = vadd.f32 %v3074_v27, %v3089_v35 }
  0xe0   :  { %v3076_v29 = vpop.f32.mrb[2].mxu0  ;;  %v227_v36 = vadd.f32 %v3089_v35, %v226_v28 }
  0xe1   :  { %v229_v30 = vpop.f32.mrb[3].mxu0  ;;  %v238_v25 = vadd.f32 %v3076_v29, %v3089_v35 }
  0xe2   :  { %v230_v3 = vadd.f32 %v3089_v35, %v229_v30 }
  0xe6   :  { %v3078_v31 = vpop.f32.mrb[4].mxu0 }
  0xe7   :  { %v3080_v32 = vpop.f32.mrb[5].mxu0 }
  0xe8   :  { %v3082_v33 = vpop.f32.mrb[6].mxu0  ;;  %v243_v29 = vadd.f32 %v3089_v35, %v3080_v32 }
  0xe9   :  { %v3084_v34 = vpop.f32.mrb[7].mxu0 }
  0xea   :  { %v246_v32 = vadd.f32 %v3089_v35, %v3084_v34  ;;  %v251_v34 = vadd.f32 %v3078_v31, %v3089_v35  ;;  %v254_v31 = vadd.f32 %v3082_v33, %v3089_v35 }
  0xef   :  { %v3092_v37 = vpop.f32.mrb[8].mxu0 }
  0xf0   :  { %v3094_v38 = vpop.f32.mrb[9].mxu0 }
  0xf1   :  { %v3096_v40 = vpop.f32.mrb[10].mxu0  ;;  %v259_v33 = vadd.f32 %v3089_v35, %v3094_v38 }
  0xf2   :  { %v3098_v43 = vpop.f32.mrb[11].mxu0 }
  0xf3   :  { %v262_v38 = vadd.f32 %v3089_v35, %v3098_v43  ;;  %v267_v43 = vadd.f32 %v3092_v37, %v3089_v35  ;;  %v270_v37 = vadd.f32 %v3096_v40, %v3089_v35 }
  0xf4   :  { %v464_v39 = vpop.f32.mrb[0].mxu1 }
  0xf5   :  { %v470_v41 = vadd.f32 %v464_v39, %v227_v36  ;;  %v2189_v42 = vpop.f32.mrb[1].mxu1 }
  0xf6   :  { %v467_v44 = vpop.f32.mrb[2].mxu1 }
  0xf7   :  { %2788 = vtanh.f32 %v470_v41  ;;  %v2190_v45 = vpop.f32.mrb[3].mxu1  ;;  %v3100_v46 = vpop.f32.mrb[12].mxu0 }
  0xf8   :  { %v3102_v47 = vpop.f32.mrb[13].mxu0 }
  0xf9   :  { %v3104_v48 = vpop.f32.mrb[14].mxu0 }
  0xfa   :  { %v3106_v49 = vpop.f32.mrb[15].mxu0 }
  0xff   :  { %v3108_v52 = vpop.f32.mrb[16].mxu0 }
 0x100   :  { %v3110_v53 = vpop.f32.mrb[17].mxu0 }
 0x101   :  { %v2789_v50 = vpop.eup %2788  ;;  %v3112_v54 = vpop.f32.mrb[18].mxu0 }
 0x102   :  { %v472_v51 = vpack.c.bf16 %v2789_v50, %v2789_v50  ;;  %v3114_v55 = vpop.f32.mrb[19].mxu0 }
 0x104   :  { %2208 = vmatmul.mubr.bf16.vlgmr.msra.gmra.mrb[28].mxu0 %v472_v51 }
 0x105   :  { %2232 = vmatpush3.bf16.msra.mxu0 %v2919_v0  ;;  %2247 = vmatprep.mubr.msk.bf16.mxu0 %vm2878_vm0, %v2877_v1 }
 0x106   :  { %2233 = vmatprep.subr.bf16.mxu0 %v2877_v1 }
 0x107   :  { %v3134_v56 = vpop.f32.mrb[20].mxu0 }
 0x108   :  { %v3136_v57 = vpop.f32.mrb[21].mxu0 }
 0x109   :  { %2234 = vmatpush3.bf16.msra.mxu0 %v2926_v2  ;;  %v3138_v58 = vpop.f32.mrb[22].mxu0 }
 0x10a   :  { %2235 = vmatprep.subr.bf16.mxu0 %v2877_v1  ;;  %v3140_v59 = vpop.f32.mrb[23].mxu0 }
 0x10d   :  { %2236 = vmatpush3.bf16.msra.mxu0 %v2938_v4 }
 0x10e   :  { %2237 = vmatprep.subr.bf16.mxu0 %v2877_v1 }
 0x10f   :  { %v3142_v60 = vpop.f32.mrb[24].mxu0 }
 0x110   :  { %v3144_v61 = vpop.f32.mrb[25].mxu0 }
 0x111   :  { %2238 = vmatpush3.bf16.msra.mxu0 %v2951_v8  ;;  %v3146_v62 = vpop.f32.mrb[26].mxu0 }
 0x112   :  { %2239 = vmatprep.subr.bf16.mxu0 %v2877_v1  ;;  %v3148_v63 = vpop.f32.mrb[27].mxu0 }
 0x115   :  { %2240 = vmatpush3.bf16.msra.mxu0 %v2966_v11 }
 0x116   :  { %2241 = vmatprep.subr.bf16.mxu0 %v2877_v1 }
 0x119   :  { %2242 = vmatpush3.bf16.msra.mxu0 %v2975_v12 }
 0x11a   :  { %2243 = vmatprep.subr.bf16.mxu0 %v2877_v1 }
 0x11d   :  { %2244 = vmatpush3.bf16.msra.mxu0 %v2989_v15 }
 0x11e   :  { %2245 = vmatprep.subr.bf16.mxu0 %v2877_v1 }
 0x121   :  { %2246 = vmatpush3.bf16.msra.mxu0 %v2999_v16 }
 0x122   :  { %2271 = vmatprep.subr.bf16.mxu0 %v2877_v1 }
 0x1d7   :  { %v509_v5 = vpop.f32.mrb[28].mxu0 }
 0x1d8   :  { %v515_v6 = vadd.f32 %v509_v5, %v230_v3  ;;  %v2209_v7 = vpop.f32.mrb[29].mxu0 }
 0x1d9   :  { %v512_v9 = vpop.f32.mrb[30].mxu0 }
 0x1da   :  { %2790 = vtanh.f32 %v515_v6  ;;  %v2210_v10 = vpop.f32.mrb[31].mxu0 }
 0x1e4   :  { %v2791_v13 = vpop.eup %2790 }
 0x1e5   :  { %v517_v14 = vpack.c.bf16 %v2791_v13, %v2791_v13 }
 0x1e7   :  { %2228 = vmatmul.mubr.bf16.vlgmr.msra.gmra.mrb[4].mxu1 %v517_v14 }
 0x1e8   :  { %2252 = vmatpush3.bf16.msra.mxu1 %v2919_v0  ;;  %2267 = vmatprep.mubr.msk.bf16.mxu1 %vm2878_vm0, %v2877_v1 }
 0x1e9   :  { %2253 = vmatprep.subr.bf16.mxu1 %v2877_v1 }
 0x1ec   :  { %2254 = vmatpush3.bf16.msra.mxu1 %v2926_v2 }
 0x1ed   :  { %2255 = vmatprep.subr.bf16.mxu1 %v2877_v1 }
 0x1f0   :  { %2256 = vmatpush3.bf16.msra.mxu1 %v2938_v4 }
 0x1f1   :  { %2257 = vmatprep.subr.bf16.mxu1 %v2877_v1 }
 0x1f4   :  { %2258 = vmatpush3.bf16.msra.mxu1 %v2951_v8 }
 0x1f5   :  { %2259 = vmatprep.subr.bf16.mxu1 %v2877_v1 }
 0x1f8   :  { %2260 = vmatpush3.bf16.msra.mxu1 %v2966_v11 }
 0x1f9   :  { %2261 = vmatprep.subr.bf16.mxu1 %v2877_v1 }
 0x1fc   :  { %2262 = vmatpush3.bf16.msra.mxu1 %v2975_v12 }
 0x1fd   :  { %2263 = vmatprep.subr.bf16.mxu1 %v2877_v1 }
 0x200   :  { %2264 = vmatpush3.bf16.msra.mxu1 %v2989_v15 }
 0x201   :  { %2265 = vmatprep.subr.bf16.mxu1 %v2877_v1 }
 0x204   :  { %2266 = vmatpush3.bf16.msra.mxu1 %v2999_v16 }
 0x205   :  { %2291 = vmatprep.subr.bf16.mxu1 %v2877_v1 }
 0x2ba   :  { %v554_v18 = vpop.f32.mrb[4].mxu1 }
 0x2bb   :  { %v560_v19 = vadd.f32 %v554_v18, %v235_v17  ;;  %v2229_v20 = vpop.f32.mrb[5].mxu1 }
 0x2bc   :  { %v557_v21 = vpop.f32.mrb[6].mxu1 }
 0x2bd   :  { %2792 = vtanh.f32 %v560_v19  ;;  %v2230_v22 = vpop.f32.mrb[7].mxu1 }
 0x2c7   :  { %v2793_v23 = vpop.eup %2792 }
 0x2c8   :  { %v562_v24 = vpack.c.bf16 %v2793_v23, %v2793_v23 }
 0x2ca   :  { %2248 = vmatmul.mubr.bf16.vlgmr.msra.gmra.mrb[32].mxu0 %v562_v24 }
 0x2cb   :  { %2272 = vmatpush3.bf16.msra.mxu0 %v2919_v0  ;;  %2287 = vmatprep.mubr.msk.bf16.mxu0 %vm2878_vm0, %v2877_v1 }
 0x2cc   :  { %2273 = vmatprep.subr.bf16.mxu0 %v2877_v1 }
 0x2cf   :  { %2274 = vmatpush3.bf16.msra.mxu0 %v2926_v2 }
 0x2d0   :  { %2275 = vmatprep.subr.bf16.mxu0 %v2877_v1 }
 0x2d3   :  { %2276 = vmatpush3.bf16.msra.mxu0 %v2938_v4 }
 0x2d4   :  { %2277 = vmatprep.subr.bf16.mxu0 %v2877_v1 }
 0x2d7   :  { %2278 = vmatpush3.bf16.msra.mxu0 %v2951_v8 }
 0x2d8   :  { %2279 = vmatprep.subr.bf16.mxu0 %v2877_v1 }
 0x2db   :  { %2280 = vmatpush3.bf16.msra.mxu0 %v2966_v11 }
 0x2dc   :  { %2281 = vmatprep.subr.bf16.mxu0 %v2877_v1 }
 0x2df   :  { %2282 = vmatpush3.bf16.msra.mxu0 %v2975_v12 }
 0x2e0   :  { %2283 = vmatprep.subr.bf16.mxu0 %v2877_v1 }
 0x2e3   :  { %2284 = vmatpush3.bf16.msra.mxu0 %v2989_v15 }
 0x2e4   :  { %2285 = vmatprep.subr.bf16.mxu0 %v2877_v1 }
 0x2e7   :  { %2286 = vmatpush3.bf16.msra.mxu0 %v2999_v16 }
 0x2e8   :  { %2311 = vmatprep.subr.bf16.mxu0 %v2877_v1 }
 0x39d   :  { %v599_v26 = vpop.f32.mrb[32].mxu0 }
 0x39e   :  { %v605_v27 = vadd.f32 %v599_v26, %v238_v25  ;;  %v2249_v28 = vpop.f32.mrb[33].mxu0 }
 0x39f   :  { %v602_v30 = vpop.f32.mrb[34].mxu0 }
 0x3a0   :  { %2794 = vtanh.f32 %v605_v27  ;;  %v2250_v36 = vpop.f32.mrb[35].mxu0 }
 0x3aa   :  { %v2795_v39 = vpop.eup %2794 }
 0x3ab   :  { %v607_v41 = vpack.c.bf16 %v2795_v39, %v2795_v39 }
 0x3ad   :  { %2268 = vmatmul.mubr.bf16.vlgmr.msra.gmra.mrb[8].mxu1 %v607_v41 }
 0x3ae   :  { %2292 = vmatpush3.bf16.msra.mxu1 %v2919_v0  ;;  %2307 = vmatprep.mubr.msk.bf16.mxu1 %vm2878_vm0, %v2877_v1 }
 0x3af   :  { %2293 = vmatprep.subr.bf16.mxu1 %v2877_v1 }
 0x3b2   :  { %2294 = vmatpush3.bf16.msra.mxu1 %v2926_v2 }
 0x3b3   :  { %2295 = vmatprep.subr.bf16.mxu1 %v2877_v1 }
 0x3b6   :  { %2296 = vmatpush3.bf16.msra.mxu1 %v2938_v4 }
 0x3b7   :  { %2297 = vmatprep.subr.bf16.mxu1 %v2877_v1 }
 0x3ba   :  { %2298 = vmatpush3.bf16.msra.mxu1 %v2951_v8 }
 0x3bb   :  { %2299 = vmatprep.subr.bf16.mxu1 %v2877_v1 }
 0x3be   :  { %2300 = vmatpush3.bf16.msra.mxu1 %v2966_v11 }
 0x3bf   :  { %2301 = vmatprep.subr.bf16.mxu1 %v2877_v1 }
 0x3c2   :  { %2302 = vmatpush3.bf16.msra.mxu1 %v2975_v12 }
 0x3c3   :  { %2303 = vmatprep.subr.bf16.mxu1 %v2877_v1 }
 0x3c6   :  { %2304 = vmatpush3.bf16.msra.mxu1 %v2989_v15 }
 0x3c7   :  { %2305 = vmatprep.subr.bf16.mxu1 %v2877_v1 }
 0x3ca   :  { %2306 = vmatpush3.bf16.msra.mxu1 %v2999_v16 }
 0x3cb   :  { %2331 = vmatprep.subr.bf16.mxu1 %v2877_v1 }
 0x480   :  { %v644_v42 = vpop.f32.mrb[8].mxu1 }
 0x481   :  { %v650_v44 = vadd.f32 %v644_v42, %v243_v29  ;;  %v2269_v45 = vpop.f32.mrb[9].mxu1 }
 0x482   :  { %v647_v50 = vpop.f32.mrb[10].mxu1 }
 0x483   :  { %2796 = vtanh.f32 %v650_v44  ;;  %v2270_v51 = vpop.f32.mrb[11].mxu1 }
 0x48d   :  { %v2797_v3 = vpop.eup %2796 }
 0x48e   :  { %v652_v5 = vpack.c.bf16 %v2797_v3, %v2797_v3 }
 0x490   :  { %2288 = vmatmul.mubr.bf16.vlgmr.msra.gmra.mrb[36].mxu0 %v652_v5 }
 0x491   :  { %2312 = vmatpush3.bf16.msra.mxu0 %v2919_v0  ;;  %2327 = vmatprep.mubr.msk.bf16.mxu0 %vm2878_vm0, %v2877_v1 }
 0x492   :  { %2313 = vmatprep.subr.bf16.mxu0 %v2877_v1 }
 0x495   :  { %2314 = vmatpush3.bf16.msra.mxu0 %v2926_v2 }
 0x496   :  { %2315 = vmatprep.subr.bf16.mxu0 %v2877_v1 }
 0x499   :  { %2316 = vmatpush3.bf16.msra.mxu0 %v2938_v4 }
 0x49a   :  { %2317 = vmatprep.subr.bf16.mxu0 %v2877_v1 }
 0x49d   :  { %2318 = vmatpush3.bf16.msra.mxu0 %v2951_v8 }
 0x49e   :  { %2319 = vmatprep.subr.bf16.mxu0 %v2877_v1 }
 0x4a1   :  { %2320 = vmatpush3.bf16.msra.mxu0 %v2966_v11 }
 0x4a2   :  { %2321 = vmatprep.subr.bf16.mxu0 %v2877_v1 }
 0x4a5   :  { %2322 = vmatpush3.bf16.msra.mxu0 %v2975_v12 }
 0x4a6   :  { %2323 = vmatprep.subr.bf16.mxu0 %v2877_v1 }
 0x4a9   :  { %2324 = vmatpush3.bf16.msra.mxu0 %v2989_v15 }
 0x4aa   :  { %2325 = vmatprep.subr.bf16.mxu0 %v2877_v1 }
 0x4ad   :  { %2326 = vmatpush3.bf16.msra.mxu0 %v2999_v16 }
 0x4ae   :  { %2351 = vmatprep.subr.bf16.mxu0 %v2877_v1 }
 0x563   :  { %v689_v6 = vpop.f32.mrb[36].mxu0 }
 0x564   :  { %v695_v7 = vadd.f32 %v689_v6, %v246_v32  ;;  %v2289_v9 = vpop.f32.mrb[37].mxu0 }
 0x565   :  { %v692_v10 = vpop.f32.mrb[38].mxu0 }
 0x566   :  { %2798 = vtanh.f32 %v695_v7  ;;  %v2290_v13 = vpop.f32.mrb[39].mxu0 }
 0x570   :  { %v2799_v14 = vpop.eup %2798 }
 0x571   :  { %v697_v17 = vpack.c.bf16 %v2799_v14, %v2799_v14 }
 0x573   :  { %2308 = vmatmul.mubr.bf16.vlgmr.msra.gmra.mrb[12].mxu1 %v697_v17 }
 0x574   :  { %2332 = vmatpush3.bf16.msra.mxu1 %v2919_v0  ;;  %2347 = vmatprep.mubr.msk.bf16.mxu1 %vm2878_vm0, %v2877_v1 }
 0x575   :  { %2333 = vmatprep.subr.bf16.mxu1 %v2877_v1 }
 0x578   :  { %2334 = vmatpush3.bf16.msra.mxu1 %v2926_v2 }
 0x579   :  { %2335 = vmatprep.subr.bf16.mxu1 %v2877_v1 }
 0x57c   :  { %2336 = vmatpush3.bf16.msra.mxu1 %v2938_v4 }
 0x57d   :  { %2337 = vmatprep.subr.bf16.mxu1 %v2877_v1 }
 0x580   :  { %2338 = vmatpush3.bf16.msra.mxu1 %v2951_v8 }
 0x581   :  { %2339 = vmatprep.subr.bf16.mxu1 %v2877_v1 }
 0x584   :  { %2340 = vmatpush3.bf16.msra.mxu1 %v2966_v11 }
 0x585   :  { %2341 = vmatprep.subr.bf16.mxu1 %v2877_v1 }
 0x588   :  { %2342 = vmatpush3.bf16.msra.mxu1 %v2975_v12 }
 0x589   :  { %2343 = vmatprep.subr.bf16.mxu1 %v2877_v1 }
 0x58c   :  { %2344 = vmatpush3.bf16.msra.mxu1 %v2989_v15 }
 0x58d   :  { %2345 = vmatprep.subr.bf16.mxu1 %v2877_v1 }
 0x590   :  { %2346 = vmatpush3.bf16.msra.mxu1 %v2999_v16 }
 0x591   :  { %2371 = vmatprep.subr.bf16.mxu1 %v2877_v1 }
 0x646   :  { %v734_v18 = vpop.f32.mrb[12].mxu1 }
 0x647   :  { %v740_v19 = vadd.f32 %v734_v18, %v251_v34  ;;  %v2309_v20 = vpop.f32.mrb[13].mxu1 }
 0x648   :  { %v737_v21 = vpop.f32.mrb[14].mxu1 }
 0x649   :  { %2800 = vtanh.f32 %v740_v19  ;;  %v2310_v22 = vpop.f32.mrb[15].mxu1 }
 0x653   :  { %v2801_v23 = vpop.eup %2800 }
 0x654   :  { %v742_v24 = vpack.c.bf16 %v2801_v23, %v2801_v23 }
 0x656   :  { %2328 = vmatmul.mubr.bf16.vlgmr.msra.gmra.mrb[40].mxu0 %v742_v24 }
 0x657   :  { %2352 = vmatpush3.bf16.msra.mxu0 %v2919_v0  ;;  %2367 = vmatprep.mubr.msk.bf16.mxu0 %vm2878_vm0, %v2877_v1 }
 0x658   :  { %2353 = vmatprep.subr.bf16.mxu0 %v2877_v1 }
 0x65b   :  { %2354 = vmatpush3.bf16.msra.mxu0 %v2926_v2 }
 0x65c   :  { %2355 = vmatprep.subr.bf16.mxu0 %v2877_v1 }
 0x65f   :  { %2356 = vmatpush3.bf16.msra.mxu0 %v2938_v4 }
 0x660   :  { %2357 = vmatprep.subr.bf16.mxu0 %v2877_v1 }
 0x663   :  { %2358 = vmatpush3.bf16.msra.mxu0 %v2951_v8 }
 0x664   :  { %2359 = vmatprep.subr.bf16.mxu0 %v2877_v1 }
 0x667   :  { %2360 = vmatpush3.bf16.msra.mxu0 %v2966_v11 }
 0x668   :  { %2361 = vmatprep.subr.bf16.mxu0 %v2877_v1 }
 0x66b   :  { %2362 = vmatpush3.bf16.msra.mxu0 %v2975_v12 }
 0x66c   :  { %2363 = vmatprep.subr.bf16.mxu0 %v2877_v1 }
 0x66f   :  { %2364 = vmatpush3.bf16.msra.mxu0 %v2989_v15 }
 0x670   :  { %2365 = vmatprep.subr.bf16.mxu0 %v2877_v1 }
 0x673   :  { %2366 = vmatpush3.bf16.msra.mxu0 %v2999_v16 }
 0x674   :  { %2391 = vmatprep.subr.bf16.mxu0 %v2877_v1 }
 0x729   :  { %v779_v25 = vpop.f32.mrb[40].mxu0 }
 0x72a   :  { %v785_v26 = vadd.f32 %v779_v25, %v254_v31  ;;  %v2329_v27 = vpop.f32.mrb[41].mxu0 }
 0x72b   :  { %v782_v28 = vpop.f32.mrb[42].mxu0 }
 0x72c   :  { %2802 = vtanh.f32 %v785_v26  ;;  %v2330_v30 = vpop.f32.mrb[43].mxu0 }
 0x736   :  { %v2803_v36 = vpop.eup %2802 }
 0x737   :  { %v787_v39 = vpack.c.bf16 %v2803_v36, %v2803_v36 }
 0x739   :  { %2348 = vmatmul.mubr.bf16.vlgmr.msra.gmra.mrb[16].mxu1 %v787_v39  ;;  %v3374_v39 = vld [vmem:[%s3729_s2] sm:$0xff]  }
 0x73a   :  { %2372 = vmatpush3.bf16.msra.mxu1 %v2919_v0  ;;  %2387 = vmatprep.mubr.msk.bf16.mxu1 %vm2878_vm0, %v2877_v1 }
 0x73b   :  { %2373 = vmatprep.subr.bf16.mxu1 %v2877_v1 }
 0x73e   :  { %2374 = vmatpush3.bf16.msra.mxu1 %v2926_v2 }
 0x73f   :  { %2375 = vmatprep.subr.bf16.mxu1 %v2877_v1 }
 0x742   :  { %2376 = vmatpush3.bf16.msra.mxu1 %v2938_v4 }
 0x743   :  { %2377 = vmatprep.subr.bf16.mxu1 %v2877_v1 }
 0x746   :  { %2378 = vmatpush3.bf16.msra.mxu1 %v2951_v8 }
 0x747   :  { %2379 = vmatprep.subr.bf16.mxu1 %v2877_v1 }
 0x74a   :  { %2380 = vmatpush3.bf16.msra.mxu1 %v2966_v11 }
 0x74b   :  { %2381 = vmatprep.subr.bf16.mxu1 %v2877_v1 }
 0x74e   :  { %2382 = vmatpush3.bf16.msra.mxu1 %v2975_v12 }
 0x74f   :  { %2383 = vmatprep.subr.bf16.mxu1 %v2877_v1 }
 0x752   :  { %2384 = vmatpush3.bf16.msra.mxu1 %v2989_v15 }
 0x753   :  { %2385 = vmatprep.subr.bf16.mxu1 %v2877_v1 }
 0x756   :  { %2386 = vmatpush3.bf16.msra.mxu1 %v2999_v16 }
 0x757   :  { %2411 = vmatprep.subr.bf16.mxu1 %v2877_v1 }
 0x80c   :  { %v824_v41 = vpop.f32.mrb[16].mxu1 }
 0x80d   :  { %v830_v29 = vadd.f32 %v824_v41, %v259_v33  ;;  %v2349_v42 = vpop.f32.mrb[17].mxu1  ;;  %v3390_v33 = vld [vmem:[%s3729_s2 + $0x10] sm:$0xff]  }
 0x80e   :  { %v827_v44 = vpop.f32.mrb[18].mxu1 }
 0x80f   :  { %2804 = vtanh.f32 %v830_v29  ;;  %v2350_v45 = vpop.f32.mrb[19].mxu1 }
 0x819   :  { %v2805_v50 = vpop.eup %2804 }
 0x81a   :  { %v832_v51 = vpack.c.bf16 %v2805_v50, %v2805_v50 }
 0x81c   :  { %2368 = vmatmul.mubr.bf16.vlgmr.msra.gmra.mrb[44].mxu0 %v832_v51 }
 0x81d   :  { %2392 = vmatpush3.bf16.msra.mxu0 %v2919_v0  ;;  %2407 = vmatprep.mubr.msk.bf16.mxu0 %vm2878_vm0, %v2877_v1 }
 0x81e   :  { %2393 = vmatprep.subr.bf16.mxu0 %v2877_v1 }
 0x821   :  { %2394 = vmatpush3.bf16.msra.mxu0 %v2926_v2 }
 0x822   :  { %2395 = vmatprep.subr.bf16.mxu0 %v2877_v1 }
 0x825   :  { %2396 = vmatpush3.bf16.msra.mxu0 %v2938_v4 }
 0x826   :  { %2397 = vmatprep.subr.bf16.mxu0 %v2877_v1 }
 0x829   :  { %2398 = vmatpush3.bf16.msra.mxu0 %v2951_v8 }
 0x82a   :  { %2399 = vmatprep.subr.bf16.mxu0 %v2877_v1 }
 0x82d   :  { %2400 = vmatpush3.bf16.msra.mxu0 %v2966_v11 }
 0x82e   :  { %2401 = vmatprep.subr.bf16.mxu0 %v2877_v1 }
 0x831   :  { %2402 = vmatpush3.bf16.msra.mxu0 %v2975_v12 }
 0x832   :  { %2403 = vmatprep.subr.bf16.mxu0 %v2877_v1 }
 0x835   :  { %2404 = vmatpush3.bf16.msra.mxu0 %v2989_v15 }
 0x836   :  { %2405 = vmatprep.subr.bf16.mxu0 %v2877_v1 }
 0x839   :  { %2406 = vmatpush3.bf16.msra.mxu0 %v2999_v16 }
 0x83a   :  { %2431 = vmatprep.subr.bf16.mxu0 %v2877_v1 }
 0x8ef   :  { %v869_v3 = vpop.f32.mrb[44].mxu0 }
 0x8f0   :  { %v875_v5 = vadd.f32 %v869_v3, %v262_v38  ;;  %v2369_v32 = vpop.f32.mrb[45].mxu0  ;;  %v283_v38 = vadd.f32 %v3100_v46, %v3089_v35  ;;  %v3451_v46 = vld [vmem:[%s3729_s2 + $0x28] sm:$0xff]  }
 0x8f1   :  { %v872_v6 = vpop.f32.mrb[46].mxu0 }
 0x8f2   :  { %2806 = vtanh.f32 %v875_v5  ;;  %v2370_v7 = vpop.f32.mrb[47].mxu0 }
 0x8fc   :  { %v2807_v9 = vpop.eup %2806 }
 0x8fd   :  { %v877_v10 = vpack.c.bf16 %v2807_v9, %v2807_v9  ;;  %v3458_v9 = vld [vmem:[%s3729_s2 + $0x30] sm:$0xff]  }
 0x8ff   :  { %2388 = vmatmul.mubr.bf16.vlgmr.msra.gmra.mrb[20].mxu1 %v877_v10  ;;  %v286_v10 = vadd.f32 %v3104_v48, %v3089_v35  ;;  %v291_v48 = vadd.f32 %v3089_v35, %v3110_v53  ;;  %v294_v53 = vadd.f32 %v3089_v35, %v3114_v55  ;;  %v299_v55 = vadd.f32 %v3108_v52, %v3089_v35 }
 0x900   :  { %2412 = vmatpush3.bf16.msra.mxu1 %v2919_v0  ;;  %2427 = vmatprep.mubr.msk.bf16.mxu1 %vm2878_vm0, %v2877_v1 }
 0x901   :  { %2413 = vmatprep.subr.bf16.mxu1 %v2877_v1 }
 0x904   :  { %2414 = vmatpush3.bf16.msra.mxu1 %v2926_v2 }
 0x905   :  { %2415 = vmatprep.subr.bf16.mxu1 %v2877_v1 }
 0x908   :  { %2416 = vmatpush3.bf16.msra.mxu1 %v2938_v4 }
 0x909   :  { %2417 = vmatprep.subr.bf16.mxu1 %v2877_v1 }
 0x90c   :  { %2418 = vmatpush3.bf16.msra.mxu1 %v2951_v8 }
 0x90d   :  { %2419 = vmatprep.subr.bf16.mxu1 %v2877_v1 }
 0x910   :  { %2420 = vmatpush3.bf16.msra.mxu1 %v2966_v11 }
 0x911   :  { %2421 = vmatprep.subr.bf16.mxu1 %v2877_v1 }
 0x914   :  { %2422 = vmatpush3.bf16.msra.mxu1 %v2975_v12 }
 0x915   :  { %2423 = vmatprep.subr.bf16.mxu1 %v2877_v1 }
 0x918   :  { %2424 = vmatpush3.bf16.msra.mxu1 %v2989_v15 }
 0x919   :  { %2425 = vmatprep.subr.bf16.mxu1 %v2877_v1 }
 0x91c   :  { %2426 = vmatpush3.bf16.msra.mxu1 %v2999_v16 }
 0x91d   :  { %2451 = vmatprep.subr.bf16.mxu1 %v2877_v1 }
 0x9d2   :  { %v914_v13 = vpop.f32.mrb[20].mxu1 }
 0x9d3   :  { %v920_v14 = vadd.f32 %v914_v13, %v267_v43  ;;  %v2389_v17 = vpop.f32.mrb[21].mxu1 }
 0x9d4   :  { %v917_v34 = vpop.f32.mrb[22].mxu1 }
 0x9d5   :  { %2808 = vtanh.f32 %v920_v14  ;;  %v2390_v18 = vpop.f32.mrb[23].mxu1 }
 0x9df   :  { %v2809_v19 = vpop.eup %2808 }
 0x9e0   :  { %v922_v20 = vpack.c.bf16 %v2809_v19, %v2809_v19 }
 0x9e2   :  { %2408 = vmatmul.mubr.bf16.vlgmr.msra.gmra.mrb[48].mxu0 %v922_v20 }
 0x9e3   :  { %2432 = vmatpush3.bf16.msra.mxu0 %v2919_v0  ;;  %2447 = vmatprep.mubr.msk.bf16.mxu0 %vm2878_vm0, %v2877_v1 }
 0x9e4   :  { %2433 = vmatprep.subr.bf16.mxu0 %v2877_v1 }
 0x9e7   :  { %2434 = vmatpush3.bf16.msra.mxu0 %v2926_v2 }
 0x9e8   :  { %2435 = vmatprep.subr.bf16.mxu0 %v2877_v1 }
 0x9eb   :  { %2436 = vmatpush3.bf16.msra.mxu0 %v2938_v4 }
 0x9ec   :  { %2437 = vmatprep.subr.bf16.mxu0 %v2877_v1 }
 0x9ef   :  { %2438 = vmatpush3.bf16.msra.mxu0 %v2951_v8 }
 0x9f0   :  { %2439 = vmatprep.subr.bf16.mxu0 %v2877_v1 }
 0x9f3   :  { %2440 = vmatpush3.bf16.msra.mxu0 %v2966_v11 }
 0x9f4   :  { %2441 = vmatprep.subr.bf16.mxu0 %v2877_v1 }
 0x9f7   :  { %2442 = vmatpush3.bf16.msra.mxu0 %v2975_v12 }
 0x9f8   :  { %2443 = vmatprep.subr.bf16.mxu0 %v2877_v1 }
 0x9fb   :  { %2444 = vmatpush3.bf16.msra.mxu0 %v2989_v15 }
 0x9fc   :  { %2445 = vmatprep.subr.bf16.mxu0 %v2877_v1 }
 0x9ff   :  { %2446 = vmatpush3.bf16.msra.mxu0 %v2999_v16 }
 0xa00   :  { %2471 = vmatprep.subr.bf16.mxu0 %v2877_v1 }
 0xab5   :  { %v959_v21 = vpop.f32.mrb[48].mxu0 }
 0xab6   :  { %v965_v22 = vadd.f32 %v959_v21, %v270_v37  ;;  %v2409_v23 = vpop.f32.mrb[49].mxu0 }
 0xab7   :  { %v962_v24 = vpop.f32.mrb[50].mxu0 }
 0xab8   :  { %2810 = vtanh.f32 %v965_v22  ;;  %v2410_v31 = vpop.f32.mrb[51].mxu0 }
 0xac2   :  { %v2811_v25 = vpop.eup %2810 }
 0xac3   :  { %v967_v26 = vpack.c.bf16 %v2811_v25, %v2811_v25 }
 0xac5   :  { %2428 = vmatmul.mubr.bf16.vlgmr.msra.gmra.mrb[24].mxu1 %v967_v26 }
 0xac6   :  { %2452 = vmatpush3.bf16.msra.mxu1 %v2919_v0  ;;  %2467 = vmatprep.mubr.msk.bf16.mxu1 %vm2878_vm0, %v2877_v1  ;;  %v275_v0 = vadd.f32 %v3089_v35, %v3102_v47  ;;  %v3383_v47 = vld [vmem:[%s3729_s2 + $0x8] sm:$0xff]  }
 0xac7   :  { %2453 = vmatprep.subr.bf16.mxu1 %v2877_v1 }
 0xaca   :  { %2454 = vmatpush3.bf16.msra.mxu1 %v2926_v2 }
 0xacb   :  { %2455 = vmatprep.subr.bf16.mxu1 %v2877_v1 }
 0xace   :  { %2456 = vmatpush3.bf16.msra.mxu1 %v2938_v4 }
 0xacf   :  { %2457 = vmatprep.subr.bf16.mxu1 %v2877_v1 }
 0xad2   :  { %2458 = vmatpush3.bf16.msra.mxu1 %v2951_v8 }
 0xad3   :  { %2459 = vmatprep.subr.bf16.mxu1 %v2877_v1 }
 0xad6   :  { %2460 = vmatpush3.bf16.msra.mxu1 %v2966_v11 }
 0xad7   :  { %2461 = vmatprep.subr.bf16.mxu1 %v2877_v1 }
 0xada   :  { %2462 = vmatpush3.bf16.msra.mxu1 %v2975_v12 }
 0xadb   :  { %2463 = vmatprep.subr.bf16.mxu1 %v2877_v1 }
 0xade   :  { %2464 = vmatpush3.bf16.msra.mxu1 %v2989_v15 }
 0xadf   :  { %2465 = vmatprep.subr.bf16.mxu1 %v2877_v1 }
 0xae2   :  { %2466 = vmatpush3.bf16.msra.mxu1 %v2999_v16 }
 0xae3   :  { %2491 = vmatprep.subr.bf16.mxu1 %v2877_v1 }
 0xb98   :  { %v1004_v2 = vpop.f32.mrb[24].mxu1 }
 0xb99   :  { %v1010_v4 = vadd.f32 %v1004_v2, %v275_v0  ;;  %v2429_v40 = vpop.f32.mrb[25].mxu1 }
 0xb9a   :  { %v1007_v27 = vpop.f32.mrb[26].mxu1 }
 0xb9b   :  { %2812 = vtanh.f32 %v1010_v4  ;;  %v2430_v28 = vpop.f32.mrb[27].mxu1 }
 0xba5   :  { %v2813_v30 = vpop.eup %2812 }
 0xba6   :  { %v1012_v36 = vpack.c.bf16 %v2813_v30, %v2813_v30 }
 0xba8   :  { %2448 = vmatmul.mubr.bf16.vlgmr.msra.gmra.mrb[52].mxu0 %v1012_v36 }
 0xba9   :  { %2472 = vmatpush3.bf16.msra.mxu0 %v3374_v39  ;;  %2487 = vmatprep.mubr.msk.bf16.mxu0 %vm2878_vm0, %v2877_v1 }
 0xbaa   :  { %2473 = vmatprep.subr.bf16.mxu0 %v2877_v1 }
 0xbad   :  { %2474 = vmatpush3.bf16.msra.mxu0 %v3383_v47 }
 0xbae   :  { %2475 = vmatprep.subr.bf16.mxu0 %v2877_v1 }
 0xbb1   :  { %2476 = vmatpush3.bf16.msra.mxu0 %v3390_v33 }
 0xbb2   :  { %2477 = vmatprep.subr.bf16.mxu0 %v2877_v1 }
 0xbb5   :  { %2478 = vmatpush3.bf16.msra.mxu0 %v2951_v8  ;;  %v278_v8 = vadd.f32 %v3089_v35, %v3106_v49  ;;  %v3417_v49 = vld [vmem:[%s3729_s2 + $0x18] sm:$0xff]   ;;  %v3552_v35 = vld [vmem:[%s3730_s3] ss:$0 sm:$0xff] }
 0xbb6   :  { %2479 = vmatprep.subr.bf16.mxu0 %v2877_v1  ;;  %v302_v52 = vadd.f32 %v3552_v35, %v3112_v54  ;;  %v307_v54 = vadd.f32 %v3552_v35, %v3136_v57  ;;  %v310_v57 = vadd.f32 %v3552_v35, %v3140_v59  ;;  %v315_v59 = vadd.f32 %v3552_v35, %v3134_v56 }
 0xbb7   :  { %v318_v56 = vadd.f32 %v3552_v35, %v3138_v58  ;;  %v323_v58 = vadd.f32 %v3552_v35, %v3144_v61  ;;  %v326_v61 = vadd.f32 %v3552_v35, %v3148_v63  ;;  %v2781_v63 = vld [vmem:[%s3731_s4 + $0x8] sm:$0xff]  }
 0xbb9   :  { %2480 = vmatpush3.bf16.msra.mxu0 %v2966_v11 }
 0xbba   :  { %2481 = vmatprep.subr.bf16.mxu0 %v2877_v1 }
 0xbbd   :  { %2482 = vmatpush3.bf16.msra.mxu0 %v2975_v12 }
 0xbbe   :  { %2483 = vmatprep.subr.bf16.mxu0 %v2877_v1 }
 0xbc1   :  { %2484 = vmatpush3.bf16.msra.mxu0 %v2989_v15 }
 0xbc2   :  { %2485 = vmatprep.subr.bf16.mxu0 %v2877_v1 }
 0xbc5   :  { %2486 = vmatpush3.bf16.msra.mxu0 %v2999_v16 }
 0xbc6   :  { %2511 = vmatprep.subr.bf16.mxu0 %v2877_v1 }
 0xc7b   :  { %v1049_v41 = vpop.f32.mrb[52].mxu0 }
 0xc7c   :  { %v1055_v29 = vadd.f32 %v1049_v41, %v278_v8  ;;  %v2449_v42 = vpop.f32.mrb[53].mxu0 }
 0xc7d   :  { %v1052_v44 = vpop.f32.mrb[54].mxu0 }
 0xc7e   :  { %2814 = vtanh.f32 %v1055_v29  ;;  %v2450_v45 = vpop.f32.mrb[55].mxu0 }
 0xc88   :  { %v2815_v50 = vpop.eup %2814 }
 0xc89   :  { %v1057_v51 = vpack.c.bf16 %v2815_v50, %v2815_v50 }
 0xc8b   :  { %2468 = vmatmul.mubr.bf16.vlgmr.msra.gmra.mrb[28].mxu1 %v1057_v51 }
 0xc8c   :  { %2492 = vmatpush3.bf16.msra.mxu1 %v3374_v39  ;;  %2507 = vmatprep.mubr.msk.bf16.mxu1 %vm2878_vm0, %v2877_v1 }
 0xc8d   :  { %2493 = vmatprep.subr.bf16.mxu1 %v2877_v1 }
 0xc90   :  { %2494 = vmatpush3.bf16.msra.mxu1 %v3383_v47 }
 0xc91   :  { %2495 = vmatprep.subr.bf16.mxu1 %v2877_v1 }
 0xc94   :  { %2496 = vmatpush3.bf16.msra.mxu1 %v3390_v33 }
 0xc95   :  { %2497 = vmatprep.subr.bf16.mxu1 %v2877_v1 }
 0xc98   :  { %2498 = vmatpush3.bf16.msra.mxu1 %v3417_v49 }
 0xc99   :  { %2499 = vmatprep.subr.bf16.mxu1 %v2877_v1 }
 0xc9c   :  { %2500 = vmatpush3.bf16.msra.mxu1 %v2966_v11 }
 0xc9d   :  { %2501 = vmatprep.subr.bf16.mxu1 %v2877_v1 }
 0xca0   :  { %2502 = vmatpush3.bf16.msra.mxu1 %v2975_v12 }
 0xca1   :  { %2503 = vmatprep.subr.bf16.mxu1 %v2877_v1 }
 0xca4   :  { %2504 = vmatpush3.bf16.msra.mxu1 %v2989_v15  ;;  %v3444_v15 = vld [vmem:[%s3729_s2 + $0x20] sm:$0xff]  }
 0xca5   :  { %2505 = vmatprep.subr.bf16.mxu1 %v2877_v1 }
 0xca8   :  { %2506 = vmatpush3.bf16.msra.mxu1 %v2999_v16 }
 0xca9   :  { %2531 = vmatprep.subr.bf16.mxu1 %v2877_v1 }
 0xd5e   :  { %v1094_v3 = vpop.f32.mrb[28].mxu1 }
 0xd5f   :  { %v1100_v5 = vadd.f32 %v1094_v3, %v283_v38  ;;  %v2469_v11 = vpop.f32.mrb[29].mxu1 }
 0xd60   :  { %v1097_v32 = vpop.f32.mrb[30].mxu1 }
 0xd61   :  { %2816 = vtanh.f32 %v1100_v5  ;;  %v2470_v6 = vpop.f32.mrb[31].mxu1 }
 0xd6b   :  { %v2817_v12 = vpop.eup %2816 }
 0xd6c   :  { %v1102_v7 = vpack.c.bf16 %v2817_v12, %v2817_v12 }
 0xd6e   :  { %2488 = vmatmul.mubr.bf16.vlgmr.msra.gmra.mrb[56].mxu0 %v1102_v7 }
 0xd6f   :  { %2512 = vmatpush3.bf16.msra.mxu0 %v3374_v39  ;;  %2527 = vmatprep.mubr.msk.bf16.mxu0 %vm2878_vm0, %v2877_v1 }
 0xd70   :  { %2513 = vmatprep.subr.bf16.mxu0 %v2877_v1 }
 0xd73   :  { %2514 = vmatpush3.bf16.msra.mxu0 %v3383_v47 }
 0xd74   :  { %2515 = vmatprep.subr.bf16.mxu0 %v2877_v1 }
 0xd77   :  { %2516 = vmatpush3.bf16.msra.mxu0 %v3390_v33 }
 0xd78   :  { %2517 = vmatprep.subr.bf16.mxu0 %v2877_v1 }
 0xd7b   :  { %2518 = vmatpush3.bf16.msra.mxu0 %v3417_v49 }
 0xd7c   :  { %2519 = vmatprep.subr.bf16.mxu0 %v2877_v1 }
 0xd7f   :  { %2520 = vmatpush3.bf16.msra.mxu0 %v3444_v15 }
 0xd80   :  { %2521 = vmatprep.subr.bf16.mxu0 %v2877_v1 }
 0xd83   :  { %2522 = vmatpush3.bf16.msra.mxu0 %v3451_v46 }
 0xd84   :  { %2523 = vmatprep.subr.bf16.mxu0 %v2877_v1 }
 0xd87   :  { %2524 = vmatpush3.bf16.msra.mxu0 %v3458_v9 }
 0xd88   :  { %2525 = vmatprep.subr.bf16.mxu0 %v2877_v1 }
 0xd8b   :  { %2526 = vmatpush3.bf16.msra.mxu0 %v2999_v16  ;;  %v3485_v16 = vld [vmem:[%s3729_s2 + $0x38] sm:$0xff]  }
 0xd8c   :  { %2551 = vmatprep.subr.bf16.mxu0 %v2877_v1 }
 0xe41   :  { %v1139_v43 = vpop.f32.mrb[56].mxu0 }
 0xe42   :  { %v1145_v13 = vadd.f32 %v1139_v43, %v286_v10  ;;  %v2489_v14 = vpop.f32.mrb[57].mxu0 }
 0xe43   :  { %v1142_v17 = vpop.f32.mrb[58].mxu0 }
 0xe44   :  { %2818 = vtanh.f32 %v1145_v13  ;;  %v2490_v34 = vpop.f32.mrb[59].mxu0 }
 0xe4e   :  { %v2819_v18 = vpop.eup %2818 }
 0xe4f   :  { %v1147_v19 = vpack.c.bf16 %v2819_v18, %v2819_v18 }
 0xe51   :  { %2508 = vmatmul.mubr.bf16.vlgmr.msra.gmra.mrb[32].mxu1 %v1147_v19 }
 0xe52   :  { %2532 = vmatpush3.bf16.msra.mxu1 %v3374_v39  ;;  %2547 = vmatprep.mubr.msk.bf16.mxu1 %vm2878_vm0, %v2877_v1 }
 0xe53   :  { %2533 = vmatprep.subr.bf16.mxu1 %v2877_v1 }
 0xe56   :  { %2534 = vmatpush3.bf16.msra.mxu1 %v3383_v47 }
 0xe57   :  { %2535 = vmatprep.subr.bf16.mxu1 %v2877_v1 }
 0xe5a   :  { %2536 = vmatpush3.bf16.msra.mxu1 %v3390_v33 }
 0xe5b   :  { %2537 = vmatprep.subr.bf16.mxu1 %v2877_v1 }
 0xe5e   :  { %2538 = vmatpush3.bf16.msra.mxu1 %v3417_v49 }
 0xe5f   :  { %2539 = vmatprep.subr.bf16.mxu1 %v2877_v1 }
 0xe62   :  { %2540 = vmatpush3.bf16.msra.mxu1 %v3444_v15 }
 0xe63   :  { %2541 = vmatprep.subr.bf16.mxu1 %v2877_v1 }
 0xe66   :  { %2542 = vmatpush3.bf16.msra.mxu1 %v3451_v46 }
 0xe67   :  { %2543 = vmatprep.subr.bf16.mxu1 %v2877_v1 }
 0xe6a   :  { %2544 = vmatpush3.bf16.msra.mxu1 %v3458_v9 }
 0xe6b   :  { %2545 = vmatprep.subr.bf16.mxu1 %v2877_v1 }
 0xe6e   :  { %2546 = vmatpush3.bf16.msra.mxu1 %v3485_v16 }
 0xe6f   :  { %2571 = vmatprep.subr.bf16.mxu1 %v2877_v1 }
 0xf24   :  { %v1184_v20 = vpop.f32.mrb[32].mxu1 }
 0xf25   :  { %v1190_v37 = vadd.f32 %v1184_v20, %v291_v48  ;;  %v2509_v21 = vpop.f32.mrb[33].mxu1 }
 0xf26   :  { %v1187_v22 = vpop.f32.mrb[34].mxu1 }
 0xf27   :  { %2820 = vtanh.f32 %v1190_v37  ;;  %v2510_v23 = vpop.f32.mrb[35].mxu1 }
 0xf31   :  { %v2821_v24 = vpop.eup %2820 }
 0xf32   :  { %v1192_v31 = vpack.c.bf16 %v2821_v24, %v2821_v24 }
 0xf34   :  { %2528 = vmatmul.mubr.bf16.vlgmr.msra.gmra.mrb[60].mxu0 %v1192_v31 }
 0xf35   :  { %2552 = vmatpush3.bf16.msra.mxu0 %v3374_v39  ;;  %2567 = vmatprep.mubr.msk.bf16.mxu0 %vm2878_vm0, %v2877_v1 }
 0xf36   :  { %2553 = vmatprep.subr.bf16.mxu0 %v2877_v1 }
 0xf39   :  { %2554 = vmatpush3.bf16.msra.mxu0 %v3383_v47 }
 0xf3a   :  { %2555 = vmatprep.subr.bf16.mxu0 %v2877_v1 }
 0xf3d   :  { %2556 = vmatpush3.bf16.msra.mxu0 %v3390_v33 }
 0xf3e   :  { %2557 = vmatprep.subr.bf16.mxu0 %v2877_v1 }
 0xf41   :  { %2558 = vmatpush3.bf16.msra.mxu0 %v3417_v49 }
 0xf42   :  { %2559 = vmatprep.subr.bf16.mxu0 %v2877_v1 }
 0xf45   :  { %2560 = vmatpush3.bf16.msra.mxu0 %v3444_v15 }
 0xf46   :  { %2561 = vmatprep.subr.bf16.mxu0 %v2877_v1 }
 0xf49   :  { %2562 = vmatpush3.bf16.msra.mxu0 %v3451_v46 }
 0xf4a   :  { %2563 = vmatprep.subr.bf16.mxu0 %v2877_v1 }
 0xf4d   :  { %2564 = vmatpush3.bf16.msra.mxu0 %v3458_v9 }
 0xf4e   :  { %2565 = vmatprep.subr.bf16.mxu0 %v2877_v1 }
 0xf51   :  { %2566 = vmatpush3.bf16.msra.mxu0 %v3485_v16 }
 0xf52   :  { %2591 = vmatprep.subr.bf16.mxu0 %v2877_v1 }
0x1007   :  { %v1229_v25 = vpop.f32.mrb[60].mxu0 }
0x1008   :  { %v1235_v26 = vadd.f32 %v1229_v25, %v294_v53  ;;  %v2529_v0 = vpop.f32.mrb[61].mxu0 }
0x1009   :  { %v1232_v2 = vpop.f32.mrb[62].mxu0 }
0x100a   :  { %2822 = vtanh.f32 %v1235_v26  ;;  %v2530_v4 = vpop.f32.mrb[63].mxu0 }
0x1014   :  { %v2823_v40 = vpop.eup %2822 }
0x1015   :  { %v1237_v27 = vpack.c.bf16 %v2823_v40, %v2823_v40 }
0x1017   :  { %2548 = vmatmul.mubr.bf16.vlgmr.msra.gmra.mrb[36].mxu1 %v1237_v27 }
0x1018   :  { %2572 = vmatpush3.bf16.msra.mxu1 %v3374_v39  ;;  %2587 = vmatprep.mubr.msk.bf16.mxu1 %vm2878_vm0, %v2877_v1 }
0x1019   :  { %2573 = vmatprep.subr.bf16.mxu1 %v2877_v1 }
0x101c   :  { %2574 = vmatpush3.bf16.msra.mxu1 %v3383_v47 }
0x101d   :  { %2575 = vmatprep.subr.bf16.mxu1 %v2877_v1 }
0x1020   :  { %2576 = vmatpush3.bf16.msra.mxu1 %v3390_v33 }
0x1021   :  { %2577 = vmatprep.subr.bf16.mxu1 %v2877_v1 }
0x1024   :  { %2578 = vmatpush3.bf16.msra.mxu1 %v3417_v49 }
0x1025   :  { %2579 = vmatprep.subr.bf16.mxu1 %v2877_v1 }
0x1028   :  { %2580 = vmatpush3.bf16.msra.mxu1 %v3444_v15 }
0x1029   :  { %2581 = vmatprep.subr.bf16.mxu1 %v2877_v1 }
0x102c   :  { %2582 = vmatpush3.bf16.msra.mxu1 %v3451_v46 }
0x102d   :  { %2583 = vmatprep.subr.bf16.mxu1 %v2877_v1 }
0x1030   :  { %2584 = vmatpush3.bf16.msra.mxu1 %v3458_v9 }
0x1031   :  { %2585 = vmatprep.subr.bf16.mxu1 %v2877_v1 }
0x1034   :  { %2586 = vmatpush3.bf16.msra.mxu1 %v3485_v16 }
0x1035   :  { %2611 = vmatprep.subr.bf16.mxu1 %v2877_v1 }
0x10ea   :  { %v1274_v28 = vpop.f32.mrb[36].mxu1 }
0x10eb   :  { %v1280_v30 = vadd.f32 %v1274_v28, %v299_v55  ;;  %v2549_v36 = vpop.f32.mrb[37].mxu1 }
0x10ec   :  { %v1277_v8 = vpop.f32.mrb[38].mxu1 }
0x10ed   :  { %2824 = vtanh.f32 %v1280_v30  ;;  %v2550_v41 = vpop.f32.mrb[39].mxu1 }
0x10f7   :  { %v2825_v29 = vpop.eup %2824 }
0x10f8   :  { %v1282_v42 = vpack.c.bf16 %v2825_v29, %v2825_v29 }
0x10fa   :  { %2568 = vmatmul.mubr.bf16.vlgmr.msra.gmra.mrb[64].mxu0 %v1282_v42 }
0x10fb   :  { %2592 = vmatpush3.bf16.msra.mxu0 %v3374_v39  ;;  %2607 = vmatprep.mubr.msk.bf16.mxu0 %vm2878_vm0, %v2877_v1 }
0x10fc   :  { %2593 = vmatprep.subr.bf16.mxu0 %v2877_v1 }
0x10ff   :  { %2594 = vmatpush3.bf16.msra.mxu0 %v3383_v47 }
0x1100   :  { %2595 = vmatprep.subr.bf16.mxu0 %v2877_v1 }
0x1103   :  { %2596 = vmatpush3.bf16.msra.mxu0 %v3390_v33 }
0x1104   :  { %2597 = vmatprep.subr.bf16.mxu0 %v2877_v1 }
0x1107   :  { %2598 = vmatpush3.bf16.msra.mxu0 %v3417_v49 }
0x1108   :  { %2599 = vmatprep.subr.bf16.mxu0 %v2877_v1 }
0x110b   :  { %2600 = vmatpush3.bf16.msra.mxu0 %v3444_v15 }
0x110c   :  { %2601 = vmatprep.subr.bf16.mxu0 %v2877_v1 }
0x110f   :  { %2602 = vmatpush3.bf16.msra.mxu0 %v3451_v46 }
0x1110   :  { %2603 = vmatprep.subr.bf16.mxu0 %v2877_v1 }
0x1113   :  { %2604 = vmatpush3.bf16.msra.mxu0 %v3458_v9 }
0x1114   :  { %2605 = vmatprep.subr.bf16.mxu0 %v2877_v1 }
0x1117   :  { %2606 = vmatpush3.bf16.msra.mxu0 %v3485_v16 }
0x1118   :  { %2631 = vmatprep.subr.bf16.mxu0 %v2877_v1 }
0x11cd   :  { %v1319_v44 = vpop.f32.mrb[64].mxu0 }
0x11ce   :  { %v1325_v45 = vadd.f32 %v1319_v44, %v302_v52  ;;  %v2569_v50 = vpop.f32.mrb[65].mxu0  ;;  %v331_v52 = vadd.f32 %v3552_v35, %v3142_v60  ;;  %v2785_v60 = vld [vmem:[%s3731_s4 + $0x28] sm:$0xff]  }
0x11cf   :  { %v1322_v51 = vpop.f32.mrb[66].mxu0 }
0x11d0   :  { %2826 = vtanh.f32 %v1325_v45  ;;  %v2570_v38 = vpop.f32.mrb[67].mxu0 }
0x11da   :  { %v2827_v3 = vpop.eup %2826 }
0x11db   :  { %v1327_v5 = vpack.c.bf16 %v2827_v3, %v2827_v3 }
0x11dd   :  { %2588 = vmatmul.mubr.bf16.vlgmr.msra.gmra.mrb[40].mxu1 %v1327_v5 }
0x11de   :  { %2612 = vmatpush3.bf16.msra.mxu1 %v3374_v39  ;;  %2627 = vmatprep.mubr.msk.bf16.mxu1 %vm2878_vm0, %v2877_v1 }
0x11df   :  { %2613 = vmatprep.subr.bf16.mxu1 %v2877_v1 }
0x11e2   :  { %2614 = vmatpush3.bf16.msra.mxu1 %v3383_v47 }
0x11e3   :  { %2615 = vmatprep.subr.bf16.mxu1 %v2877_v1 }
0x11e6   :  { %2616 = vmatpush3.bf16.msra.mxu1 %v3390_v33 }
0x11e7   :  { %2617 = vmatprep.subr.bf16.mxu1 %v2877_v1 }
0x11ea   :  { %2618 = vmatpush3.bf16.msra.mxu1 %v3417_v49 }
0x11eb   :  { %2619 = vmatprep.subr.bf16.mxu1 %v2877_v1 }
0x11ee   :  { %2620 = vmatpush3.bf16.msra.mxu1 %v3444_v15 }
0x11ef   :  { %2621 = vmatprep.subr.bf16.mxu1 %v2877_v1 }
0x11f2   :  { %2622 = vmatpush3.bf16.msra.mxu1 %v3451_v46 }
0x11f3   :  { %2623 = vmatprep.subr.bf16.mxu1 %v2877_v1 }
0x11f6   :  { %2624 = vmatpush3.bf16.msra.mxu1 %v3458_v9 }
0x11f7   :  { %2625 = vmatprep.subr.bf16.mxu1 %v2877_v1 }
0x11fa   :  { %2626 = vmatpush3.bf16.msra.mxu1 %v3485_v16 }
0x11fb   :  { %2651 = vmatprep.subr.bf16.mxu1 %v2877_v1 }
0x12b0   :  { %v1364_v11 = vpop.f32.mrb[40].mxu1 }
0x12b1   :  { %v1370_v32 = vadd.f32 %v1364_v11, %v307_v54  ;;  %v2589_v6 = vpop.f32.mrb[41].mxu1  ;;  %v2784_v54 = vld [vmem:[%s3731_s4 + $0x20] sm:$0xff]   ;;  %v2786_v11 = vld [vmem:[%s3731_s4 + $0x30] sm:$0xff]  }
0x12b2   :  { %v1367_v12 = vpop.f32.mrb[42].mxu1  ;;  %v334_v6 = vadd.f32 %v3552_v35, %v3146_v62 }
0x12b3   :  { %2828 = vtanh.f32 %v1370_v32  ;;  %v2590_v7 = vpop.f32.mrb[43].mxu1  ;;  %v2787_v32 = vld [vmem:[%s3731_s4 + $0x38] sm:$0xff]  }
0x12bd   :  { %v2829_v10 = vpop.eup %2828 }
0x12be   :  { %v1372_v43 = vpack.c.bf16 %v2829_v10, %v2829_v10 }
0x12c0   :  { %2608 = vmatmul.mubr.bf16.vlgmr.msra.gmra.mrb[68].mxu0 %v1372_v43 }
0x12c1   :  { %2632 = vmatpush3.bf16.msra.mxu0 %v3374_v39  ;;  %2647 = vmatprep.mubr.msk.bf16.mxu0 %vm2878_vm0, %v2877_v1 }
0x12c2   :  { %2633 = vmatprep.subr.bf16.mxu0 %v2877_v1 }
0x12c5   :  { %2634 = vmatpush3.bf16.msra.mxu0 %v3383_v47 }
0x12c6   :  { %2635 = vmatprep.subr.bf16.mxu0 %v2877_v1 }
0x12c9   :  { %2636 = vmatpush3.bf16.msra.mxu0 %v3390_v33 }
0x12ca   :  { %2637 = vmatprep.subr.bf16.mxu0 %v2877_v1 }
0x12cd   :  { %2638 = vmatpush3.bf16.msra.mxu0 %v3417_v49 }
0x12ce   :  { %2639 = vmatprep.subr.bf16.mxu0 %v2877_v1 }
0x12d1   :  { %2640 = vmatpush3.bf16.msra.mxu0 %v3444_v15 }
0x12d2   :  { %2641 = vmatprep.subr.bf16.mxu0 %v2877_v1 }
0x12d5   :  { %2642 = vmatpush3.bf16.msra.mxu0 %v3451_v46 }
0x12d6   :  { %2643 = vmatprep.subr.bf16.mxu0 %v2877_v1 }
0x12d9   :  { %2644 = vmatpush3.bf16.msra.mxu0 %v3458_v9 }
0x12da   :  { %2645 = vmatprep.subr.bf16.mxu0 %v2877_v1 }
0x12dd   :  { %2646 = vmatpush3.bf16.msra.mxu0 %v3485_v16 }
0x12de   :  { %2671 = vmatprep.subr.bf16.mxu0 %v2877_v1 }
0x1393   :  { %v1409_v13 = vpop.f32.mrb[68].mxu0 }
0x1394   :  { %v1415_v14 = vadd.f32 %v1409_v13, %v310_v57  ;;  %v2609_v17 = vpop.f32.mrb[69].mxu0 }
0x1395   :  { %v1412_v34 = vpop.f32.mrb[70].mxu0 }
0x1396   :  { %2830 = vtanh.f32 %v1415_v14  ;;  %v2610_v18 = vpop.f32.mrb[71].mxu0 }
0x13a0   :  { %v2831_v19 = vpop.eup %2830 }
0x13a1   :  { %v1417_v48 = vpack.c.bf16 %v2831_v19, %v2831_v19 }
0x13a3   :  { %2628 = vmatmul.mubr.bf16.vlgmr.msra.gmra.mrb[44].mxu1 %v1417_v48 }
0x13a4   :  { %2652 = vmatpush3.bf16.msra.mxu1 %v3374_v39  ;;  %2667 = vmatprep.mubr.msk.bf16.mxu1 %vm2878_vm0, %v2877_v1 }
0x13a5   :  { %2653 = vmatprep.subr.bf16.mxu1 %v2877_v1 }
0x13a8   :  { %2654 = vmatpush3.bf16.msra.mxu1 %v3383_v47 }
0x13a9   :  { %2655 = vmatprep.subr.bf16.mxu1 %v2877_v1 }
0x13ac   :  { %2656 = vmatpush3.bf16.msra.mxu1 %v3390_v33 }
0x13ad   :  { %2657 = vmatprep.subr.bf16.mxu1 %v2877_v1 }
0x13b0   :  { %2658 = vmatpush3.bf16.msra.mxu1 %v3417_v49 }
0x13b1   :  { %2659 = vmatprep.subr.bf16.mxu1 %v2877_v1 }
0x13b4   :  { %2660 = vmatpush3.bf16.msra.mxu1 %v3444_v15 }
0x13b5   :  { %2661 = vmatprep.subr.bf16.mxu1 %v2877_v1 }
0x13b8   :  { %2662 = vmatpush3.bf16.msra.mxu1 %v3451_v46 }
0x13b9   :  { %2663 = vmatprep.subr.bf16.mxu1 %v2877_v1 }
0x13bc   :  { %2664 = vmatpush3.bf16.msra.mxu1 %v3458_v9 }
0x13bd   :  { %2665 = vmatprep.subr.bf16.mxu1 %v2877_v1 }
0x13c0   :  { %2666 = vmatpush3.bf16.msra.mxu1 %v3485_v16 }
0x13c1   :  { %2691 = vmatprep.subr.bf16.mxu1 %v2877_v1 }
0x1476   :  { %v1454_v20 = vpop.f32.mrb[44].mxu1 }
0x1477   :  { %v1460_v37 = vadd.f32 %v1454_v20, %v315_v59  ;;  %v2629_v21 = vpop.f32.mrb[45].mxu1 }
0x1478   :  { %v1457_v22 = vpop.f32.mrb[46].mxu1 }
0x1479   :  { %2832 = vtanh.f32 %v1460_v37  ;;  %v2630_v23 = vpop.f32.mrb[47].mxu1 }
0x1483   :  { %v2833_v24 = vpop.eup %2832 }
0x1484   :  { %v1462_v31 = vpack.c.bf16 %v2833_v24, %v2833_v24 }
0x1486   :  { %2648 = vmatmul.mubr.bf16.vlgmr.msra.gmra.mrb[72].mxu0 %v1462_v31 }
0x1487   :  { %2672 = vmatpush3.bf16.msra.mxu0 %v3374_v39  ;;  %2687 = vmatprep.mubr.msk.bf16.mxu0 %vm2878_vm0, %v2877_v1 }
0x1488   :  { %2673 = vmatprep.subr.bf16.mxu0 %v2877_v1 }
0x148b   :  { %2674 = vmatpush3.bf16.msra.mxu0 %v3383_v47 }
0x148c   :  { %2675 = vmatprep.subr.bf16.mxu0 %v2877_v1 }
0x148f   :  { %2676 = vmatpush3.bf16.msra.mxu0 %v3390_v33 }
0x1490   :  { %2677 = vmatprep.subr.bf16.mxu0 %v2877_v1 }
0x1493   :  { %2678 = vmatpush3.bf16.msra.mxu0 %v3417_v49 }
0x1494   :  { %2679 = vmatprep.subr.bf16.mxu0 %v2877_v1 }
0x1497   :  { %2680 = vmatpush3.bf16.msra.mxu0 %v3444_v15 }
0x1498   :  { %2681 = vmatprep.subr.bf16.mxu0 %v2877_v1 }
0x149b   :  { %2682 = vmatpush3.bf16.msra.mxu0 %v3451_v46 }
0x149c   :  { %2683 = vmatprep.subr.bf16.mxu0 %v2877_v1 }
0x149f   :  { %2684 = vmatpush3.bf16.msra.mxu0 %v3458_v9 }
0x14a0   :  { %2685 = vmatprep.subr.bf16.mxu0 %v2877_v1 }
0x14a3   :  { %2686 = vmatpush3.bf16.msra.mxu0 %v3485_v16 }
0x14a4   :  { %2711 = vmatprep.subr.bf16.mxu0 %v2877_v1 }
0x1559   :  { %v1499_v53 = vpop.f32.mrb[72].mxu0 }
0x155a   :  { %v1505_v25 = vadd.f32 %v1499_v53, %v318_v56  ;;  %v2649_v26 = vpop.f32.mrb[73].mxu0 }
0x155b   :  { %v1502_v0 = vpop.f32.mrb[74].mxu0 }
0x155c   :  { %2834 = vtanh.f32 %v1505_v25  ;;  %v2650_v2 = vpop.f32.mrb[75].mxu0 }
0x1566   :  { %v2835_v4 = vpop.eup %2834 }
0x1567   :  { %v1507_v40 = vpack.c.bf16 %v2835_v4, %v2835_v4 }
0x1569   :  { %2668 = vmatmul.mubr.bf16.vlgmr.msra.gmra.mrb[48].mxu1 %v1507_v40 }
0x156a   :  { %2692 = vmatpush3.bf16.msra.mxu1 %v3374_v39  ;;  %2707 = vmatprep.mubr.msk.bf16.mxu1 %vm2878_vm0, %v2877_v1 }
0x156b   :  { %2693 = vmatprep.subr.bf16.mxu1 %v2877_v1 }
0x156e   :  { %2694 = vmatpush3.bf16.msra.mxu1 %v3383_v47 }
0x156f   :  { %2695 = vmatprep.subr.bf16.mxu1 %v2877_v1 }
0x1572   :  { %2696 = vmatpush3.bf16.msra.mxu1 %v3390_v33 }
0x1573   :  { %2697 = vmatprep.subr.bf16.mxu1 %v2877_v1 }
0x1576   :  { %2698 = vmatpush3.bf16.msra.mxu1 %v3417_v49 }
0x1577   :  { %2699 = vmatprep.subr.bf16.mxu1 %v2877_v1 }
0x157a   :  { %2700 = vmatpush3.bf16.msra.mxu1 %v3444_v15 }
0x157b   :  { %2701 = vmatprep.subr.bf16.mxu1 %v2877_v1 }
0x157e   :  { %2702 = vmatpush3.bf16.msra.mxu1 %v3451_v46 }
0x157f   :  { %2703 = vmatprep.subr.bf16.mxu1 %v2877_v1 }
0x1582   :  { %2704 = vmatpush3.bf16.msra.mxu1 %v3458_v9 }
0x1583   :  { %2705 = vmatprep.subr.bf16.mxu1 %v2877_v1 }
0x1586   :  { %2706 = vmatpush3.bf16.msra.mxu1 %v3485_v16 }
0x1587   :  { %2731 = vmatprep.subr.bf16.mxu1 %v2877_v1 }
0x163c   :  { %v1544_v27 = vpop.f32.mrb[48].mxu1 }
0x163d   :  { %v1550_v55 = vadd.f32 %v1544_v27, %v323_v58  ;;  %v2669_v28 = vpop.f32.mrb[49].mxu1 }
0x163e   :  { %v1547_v30 = vpop.f32.mrb[50].mxu1 }
0x163f   :  { %2836 = vtanh.f32 %v1550_v55  ;;  %v2670_v36 = vpop.f32.mrb[51].mxu1 }
0x1649   :  { %v2837_v8 = vpop.eup %2836 }
0x164a   :  { %v1552_v41 = vpack.c.bf16 %v2837_v8, %v2837_v8 }
0x164c   :  { %2688 = vmatmul.mubr.bf16.vlgmr.msra.gmra.mrb[76].mxu0 %v1552_v41 }
0x164d   :  { %2712 = vmatpush3.bf16.msra.mxu0 %v3374_v39  ;;  %2727 = vmatprep.mubr.msk.bf16.mxu0 %vm2878_vm0, %v2877_v1 }
0x164e   :  { %2713 = vmatprep.subr.bf16.mxu0 %v2877_v1 }
0x1651   :  { %2714 = vmatpush3.bf16.msra.mxu0 %v3383_v47 }
0x1652   :  { %2715 = vmatprep.subr.bf16.mxu0 %v2877_v1 }
0x1655   :  { %2716 = vmatpush3.bf16.msra.mxu0 %v3390_v33 }
0x1656   :  { %2717 = vmatprep.subr.bf16.mxu0 %v2877_v1 }
0x1659   :  { %2718 = vmatpush3.bf16.msra.mxu0 %v3417_v49 }
0x165a   :  { %2719 = vmatprep.subr.bf16.mxu0 %v2877_v1 }
0x165d   :  { %2720 = vmatpush3.bf16.msra.mxu0 %v3444_v15 }
0x165e   :  { %2721 = vmatprep.subr.bf16.mxu0 %v2877_v1 }
0x1661   :  { %2722 = vmatpush3.bf16.msra.mxu0 %v3451_v46  ;;  %v2780_v46 = vld [vmem:[%s3731_s4] sm:$0xff]  }
0x1662   :  { %2723 = vmatprep.subr.bf16.mxu0 %v2877_v1 }
0x1665   :  { %2724 = vmatpush3.bf16.msra.mxu0 %v3458_v9  ;;  %v2782_v9 = vld [vmem:[%s3731_s4 + $0x10] sm:$0xff]  }
0x1666   :  { %2725 = vmatprep.subr.bf16.mxu0 %v2877_v1 }
0x1669   :  { %2726 = vmatpush3.bf16.msra.mxu0 %v3485_v16  ;;  %v2783_v16 = vld [vmem:[%s3731_s4 + $0x18] sm:$0xff]   ;;  %s2853_s4 = scalar_lea.vmem %s1807_s29, 128 }
0x166a   :  { %p2854_p0 = scmp.ne.s32.totalorder %s1807_s29, %s2853_s4  ;;  %p2859_p2 = scmp.lt.s32.totalorder %s2853_s4, %s2853_s4 }
0x166c   :  { %p2860_p3 = por %p2859_p2, %p2858_p1 }
0x166e   :  { %p2861_p4 = pnand %p2860_p3, %p2854_p0 }
0x171f   :  { %v1589_v39 = vpop.f32.mrb[76].mxu0 }
0x1720   :  { %v1595_v47 = vadd.f32 %v1589_v39, %v326_v61  ;;  %v2689_v33 = vpop.f32.mrb[77].mxu0 }
0x1721   :  { %v1592_v49 = vpop.f32.mrb[78].mxu0 }
0x1722   :  { %2838 = vtanh.f32 %v1595_v47  ;;  %v2690_v15 = vpop.f32.mrb[79].mxu0 }
0x172c   :  { %v2839_v29 = vpop.eup %2838 }
0x172d   :  { %v1597_v42 = vpack.c.bf16 %v2839_v29, %v2839_v29 }
0x172f   :  { %2708 = vmatmul.mubr.bf16.vlgmr.msra.gmra.mrb[52].mxu1 %v1597_v42 }
0x1730   :  { %2747 = vmatprep.mubr.msk.bf16.mxu1 %vm2878_vm0, %v2877_v1  ;;  %2732 = vmatpush3.bf16.msra.mxu1 %v2780_v46 }
0x1731   :  { %2733 = vmatprep.subr.bf16.mxu1 %v2877_v1 }
0x1734   :  { %2734 = vmatpush3.bf16.msra.mxu1 %v2781_v63 }
0x1735   :  { %2735 = vmatprep.subr.bf16.mxu1 %v2877_v1 }
0x1738   :  { %2736 = vmatpush3.bf16.msra.mxu1 %v2782_v9 }
0x1739   :  { %2737 = vmatprep.subr.bf16.mxu1 %v2877_v1 }
0x173c   :  { %2738 = vmatpush3.bf16.msra.mxu1 %v2783_v16 }
0x173d   :  { %2739 = vmatprep.subr.bf16.mxu1 %v2877_v1 }
0x1740   :  { %2740 = vmatpush3.bf16.msra.mxu1 %v2784_v54 }
0x1741   :  { %2741 = vmatprep.subr.bf16.mxu1 %v2877_v1 }
0x1744   :  { %2742 = vmatpush3.bf16.msra.mxu1 %v2785_v60 }
0x1745   :  { %2743 = vmatprep.subr.bf16.mxu1 %v2877_v1 }
0x1748   :  { %2744 = vmatpush3.bf16.msra.mxu1 %v2786_v11 }
0x1749   :  { %2745 = vmatprep.subr.bf16.mxu1 %v2877_v1  ;;  %v1853_v1 = vld [vmem:[%s3732_s5] ss:$0 sm:$0xff] }
0x174c   :  { %2746 = vmatpush3.bf16.msra.mxu1 %v2787_v32 }
0x1802   :  { %v1634_v44 = vpop.f32.mrb[52].mxu1 }
0x1803   :  { %v1640_v45 = vadd.f32 %v1634_v44, %v331_v52  ;;  %v2709_v50 = vpop.f32.mrb[53].mxu1 }
0x1804   :  { %v1637_v51 = vpop.f32.mrb[54].mxu1 }
0x1805   :  { %2840 = vtanh.f32 %v1640_v45  ;;  %v2710_v38 = vpop.f32.mrb[55].mxu1 }
0x180f   :  { %v2841_v3 = vpop.eup %2840 }
0x1810   :  { %v1642_v5 = vpack.c.bf16 %v2841_v3, %v2841_v3 }
0x1812   :  { %2728 = vmatmul.mubr.bf16.vlgmr.msra.gmra.mrb[80].mxu0 %v1642_v5 }
0x18e5   :  { %v1679_v12 = vpop.f32.mrb[80].mxu0 }
0x18e6   :  { %v1685_v7 = vadd.f32 %v1679_v12, %v334_v6  ;;  %v2729_v10 = vpop.f32.mrb[81].mxu0 }
0x18e7   :  { %v1682_v43 = vpop.f32.mrb[82].mxu0 }
0x18e8   :  { %2842 = vtanh.f32 %v1685_v7  ;;  %v2730_v57 = vpop.f32.mrb[83].mxu0 }
0x18f2   :  { %v2843_v13 = vpop.eup %2842 }
0x18f3   :  { %v1687_v14 = vpack.c.bf16 %v2843_v13, %v2843_v13 }
0x18f5   :  { %2748 = vmatmul.mubr.bf16.vlgmr.msra.gmra.mrb[56].mxu1 %v1687_v14 }
0x19c8   :  { %v1793_v17 = vpop.f32.mrb[56].mxu1 }
0x19c9   :  { %v1794_v34 = vadd.f32 %v1853_v1, %v1793_v17  ;;  %v2749_v18 = vpop.f32.mrb[57].mxu1 }
0x19ca   :  { %v1796_v62 = vpop.f32.mrb[58].mxu1 }
0x19cb   :  { %1799 = vst [vmem:[#allocation3] sm:$0xff] %v1794_v34  ;;  %v2750_v35 = vpop.f32.mrb[59].mxu1 }
0x19cc   :  { %2864 = shalt.err (!%p2861_p4)
}
0x19cd   :  { %s2865_s5 = scalar_lea.hbm %s3733_s6, 128 }
0x19ce   :  { %p2866_p5 = scmp.ne.s32.totalorder %s3733_s6, %s2865_s5  ;;  %p2869_p6 = scmp.lt.u32.totalorder %s2865_s5, %s3733_s6 }
0x19d0   :  { %p2871_p7 = pnand %p2869_p6, %p2866_p5 }
0x19d2   :  { %2874 = shalt.err (!%p2871_p7)
}
0x19d3   :  { %1809 = dma.vmem_to_hbm [thread:$0]  %s1807_s29, 128, %s3733_s6, [#allocation4]  }
0x19d4   :  { %2875 = dma.done.wait [#allocation4], 128  }
0x19d5   :  { %2876 = vsyncadd [#allocation4], 4294967168 }
0x19d6   :  { %1813 = vsyncpa [#allocation4], 1 }

</bundles_post_ra>
